<compile_context>
chip_gen: v6e
topology: v6e:2x2x1
jax: 0.10.0
libtpu: 0.0.40
codegen_flags: <defaults>
</compile_context>

<pallas_src>
import math
import jax
import jax.numpy as jnp
from jax import lax
from jax.experimental import pallas as pl
from jax.experimental.pallas import tpu as pltpu

# --------------- small synthetic config (original: D=512, H=64, 15 layers) ---
VOCAB = 16          # len(dictionary) incl. specials + [MASK]
PAD = 0             # dictionary.pad()
D = 32              # embed_dim
H = 4               # attention_heads
HD = D // H         # head dim
FFN = 64            # ffn_embed_dim
LAYERS = 2          # encoder_layers
K = 128             # Gaussian kernel size (kept at 128: lane friendly)
B = 2
N = 8
LN_EPS = 1e-5


def _gelu(x):
    # exact (erf) gelu, matching torch.nn.functional.gelu default
    return 0.5 * x * (1.0 + lax.erf(x * (1.0 / math.sqrt(2.0))))


def _layernorm(x, w, b):
    mu = jnp.mean(x, axis=-1, keepdims=True)
    var = jnp.mean((x - mu) * (x - mu), axis=-1, keepdims=True)
    return (x - mu) * lax.rsqrt(var + LN_EPS) * w + b


# -----------------------------------------------------------------------------
# Kernel 1: GaussianLayer + NonLinearHead (gbf_proj) fused.
#   Transposed compute: K on sublanes, flattened (batch, pair) index on lanes.
#   Batch is folded into the lane axis -> full 128-lane slabs and stores.
#   Gaussian coefficient is pre-folded into w1t columns; mean pre-scaled by
#   1/std -> only multiplies inside.
# -----------------------------------------------------------------------------
def _gbf_bias_kernel(dist_ref, mul_ref, gb_ref, mean_s_ref, istd_ref,
                     w1t_ref, b1_ref, w2t_ref, b2_ref, out_ref):
    x = mul_ref[...] * dist_ref[...] + gb_ref[...]                 # (1, C)
    a = x * istd_ref[...] - mean_s_ref[...]                        # (K, C)
    g = jnp.exp(-0.5 * (a * a))                                    # (K, C) f32
    h = jnp.dot(w1t_ref[...], g.astype(jnp.bfloat16),
                preferred_element_type=jnp.float32) + b1_ref[...]  # (K, C)
    h = _gelu(h)
    out_ref[...] = jnp.dot(w2t_ref[...], h.astype(jnp.bfloat16),
                           preferred_element_type=jnp.float32) + b2_ref[...]


def gbf_attn_bias(dist, edge_type, gbf_p, proj_p):
    b, n, _ = dist.shape
    bnn = b * n * n
    et = edge_type.reshape(-1)
    mul = jnp.take(gbf_p['mul'], et, axis=0).reshape(1, bnn)
    gb = jnp.take(gbf_p['bias'], et, axis=0).reshape(1, bnn)
    dist_f = dist.reshape(1, bnn).astype(jnp.float32)

    # 128-lane-aligned pair-column chunks; toy bnn = B*N*N = 128 -> one step.
    chunk = bnn if bnn % 128 != 0 else min(bnn, 512)
    assert bnn % chunk == 0

    col = lambda c: (0, c)
    cst = lambda c: (0, 0)
    out = pl.pallas_call(
        _gbf_bias_kernel,
        out_shape=jax.ShapeDtypeStruct((H, bnn), jnp.float32),
        grid_spec=pltpu.PrefetchScalarGridSpec(
            num_scalar_prefetch=0,
            grid=(bnn // chunk,),
            in_specs=[
                pl.BlockSpec((1, chunk), col),
                pl.BlockSpec((1, chunk), col),
                pl.BlockSpec((1, chunk), col),
                pl.BlockSpec((K, 1), cst),
                pl.BlockSpec((K, 1), cst),
                pl.BlockSpec((K, K), cst),
                pl.BlockSpec((K, 1), cst),
                pl.BlockSpec((H, K), cst),
                pl.BlockSpec((H, 1), cst),
            ],
            out_specs=pl.BlockSpec((H, chunk), col),
        ),
        compiler_params=pltpu.CompilerParams(
            dimension_semantics=("parallel",),
            vmem_limit_bytes=32 * 1024 * 1024),
    )(dist_f, mul, gb, gbf_p['mean_s'], gbf_p['istd'],
      proj_p['w1t_c'], proj_p['b1'], proj_p['w2t'], proj_p['b2'])
    # (H, B*N*N) viewed head-major as (H, B, N, N); consumed directly by the
    # encoder kernel (per-batch slice there is a free reshape) -> no transpose.
    return out.reshape(H, b, n, n)


# -----------------------------------------------------------------------------
# Kernel 2: ALL transformer encoder layers fused; grid = (batch, layer).
#   x carried in the resident, aliased output block; pair bias (pre-softmax
#   scores) carried in VMEM scratch; padding fused in at layer 0.
# -----------------------------------------------------------------------------
def _encoder_stack_kernel(x_in_ref, bias_in_ref, padq_ref, padk_ref,
                          wqkv_ref, bqkv_ref, wo_ref, w1_ref, w2_ref,
                          vecs_ref, b1_ref,
                          x_ref, bias_scr):
    l = pl.program_id(1)
    h, n, _ = bias_scr.shape

    @pl.when(l == 0)
    def _():
        # x * (1 - pad) and -inf key fill, fused from the wrapper.
        x_ref[0] = x_in_ref[0] * (1.0 - padq_ref[0])
        bias0 = bias_in_ref[...].reshape(h, n, n)      # (H,1,N,N)->(H,N,N) free
        bias_scr[...] = jnp.where(padk_ref[0] > 0.0, -jnp.inf, bias0)

    x = x_ref[0]                                       # (N, D) f32
    bias = bias_scr[...]                               # (H, N, N) f32

    vecs = vecs_ref[0]                                 # (8, D) f32 blob
    ln1w, ln1b = vecs[0:1, :], vecs[1:2, :]
    ln2w, ln2b = vecs[2:3, :], vecs[3:4, :]
    bo, b2 = vecs[4:5, :], vecs[5:6, :]

    # ---- self attention (pre-LN); heads batched on the leading axis ----
    y = _layernorm(x, ln1w, ln1b)                      # (N, D)
    yh = jnp.broadcast_to(y.astype(jnp.bfloat16), (h,) + y.shape)   # (H, N, D)
    wqkv = wqkv_ref[0]                                 # (3, H, D, hd) bf16
    bqkv = bqkv_ref[0]                                 # (3, H, 1, hd) f32
    # hd**-0.5 is pre-folded into Wq / bq host-side.
    q = jnp.einsum('hnd,hdc->hnc', yh, wqkv[0],
                   preferred_element_type=jnp.float32) + bqkv[0]
    k = jnp.einsum('hnd,hdc->hnc', yh, wqkv[1],
                   preferred_element_type=jnp.float32) + bqkv[1]
    v = jnp.einsum('hnd,hdc->hnc', yh, wqkv[2],
                   preferred_element_type=jnp.float32) + bqkv[2]

    s = jnp.einsum('hqc,hkc->hqk',
                   q.astype(jnp.bfloat16), k.astype(jnp.bfloat16),
                   preferred_element_type=jnp.float32) + bias       # (H, N, N)
    bias_scr[...] = s           # next layer's attn bias = pre-softmax scores

    m = jnp.max(s, axis=-1, keepdims=True)
    e = jnp.exp(s - m)
    p = e * pl.reciprocal(jnp.sum(e, axis=-1, keepdims=True), approx=True)

    ctx = jnp.einsum('hqk,hkc->hqc',
                     p.astype(jnp.bfloat16), v.astype(jnp.bfloat16),
                     preferred_element_type=jnp.float32)            # (H, N, hd)
    oh = jnp.einsum('hnc,hcd->hnd',
                    ctx.astype(jnp.bfloat16), wo_ref[0],
                    preferred_element_type=jnp.float32)             # (H, N, D)
    x = x + jnp.sum(oh, axis=0) + bo                                # (N, D)

    # ---- feed forward (pre-LN) ----
    y2 = _layernorm(x, ln2w, ln2b)
    f = jnp.dot(y2.astype(jnp.bfloat16), w1_ref[0],
                preferred_element_type=jnp.float32) + b1_ref[0]     # (N, FFN)
    f = _gelu(f)
    f = jnp.dot(f.astype(jnp.bfloat16), w2_ref[0],
                preferred_element_type=jnp.float32) + b2            # (N, D)
    x_ref[0] = x + f


def encoder_stack(x, bias_hm, pad, sp):
    b, n, d = x.shape
    h = bias_hm.shape[0]
    nlayers = sp['w_qkv'].shape[0]

    padq = pad.astype(jnp.float32).reshape(b, n, 1)        # token mask
    padk = pad.astype(jnp.float32).reshape(b, 1, 1, n)     # key mask

    xmap = lambda bi, li: (bi, 0, 0)
    bmap = lambda bi, li: (0, bi, 0, 0)
    pqmap = lambda bi, li: (bi, 0, 0)
    pkmap = lambda bi, li: (bi, 0, 0, 0)

    def wspec(w):
        zeros = (0,) * (w.ndim - 1)
        return pl.BlockSpec((1,) + tuple(w.shape[1:]),
                            lambda bi, li, z=zeros: (li,) + z)

    weight_names = ['w_qkv', 'b_qkv', 'wo', 'w1', 'w2', 'vecs', 'b1']
    weights = [sp[name] for name in weight_names]

    return pl.pallas_call(
        _encoder_stack_kernel,
        out_shape=jax.ShapeDtypeStruct((b, n, d), jnp.float32),
        grid_spec=pltpu.PrefetchScalarGridSpec(
            num_scalar_prefetch=0,
            grid=(b, nlayers),
            in_specs=[pl.BlockSpec((1, n, d), xmap),
                      pl.BlockSpec((h, 1, n, n), bmap),
                      pl.BlockSpec((1, n, 1), pqmap),
                      pl.BlockSpec((1, 1, 1, n), pkmap)]
                     + [wspec(w) for w in weights],
            out_specs=pl.BlockSpec((1, n, d), xmap),
            scratch_shapes=[pltpu.VMEM((h, n, n), jnp.float32)]),
        compiler_params=pltpu.CompilerParams(
            dimension_semantics=("parallel", "arbitrary"),
            vmem_limit_bytes=32 * 1024 * 1024),
        input_output_aliases={0: 0},
    )(x, bias_hm, padq, padk, *weights)


# -----------------------------------------------------------------------------
# Parameter init (deterministic, synthetic) already in kernel layout:
#   * attention weights head-major (a real checkpoint's (D,D) Wq would map via
#     Wq.T.reshape(D,H,hd).transpose(1,0,2)); hd**-0.5 folded into Wq/bq,
#   * per-layer LN/bias vectors packed into one (L, 8, D) blob,
#   * Gaussian coef folded into gbf_proj W1 columns, means pre-scaled by 1/std.
# -----------------------------------------------------------------------------
def init_params(key):
    kit = iter(jax.random.split(key, 16))

    def nrm(shape):
        return 0.02 * jax.random.normal(next(kit), shape, jnp.float32)

    emb = nrm((VOCAB, D)).at[PAD].set(0.0)             # pad row zeroed
    params = {
        'embed_tokens': emb,
        'emb_ln_w': jnp.ones((1, 1, D), jnp.float32),
        'emb_ln_b': jnp.zeros((1, 1, D), jnp.float32),
        'final_ln_w': jnp.ones((1, 1, D), jnp.float32),
        'final_ln_b': jnp.zeros((1, 1, D), jnp.float32),
    }

    L = LAYERS
    scale = float(HD) ** -0.5
    w_q = nrm((L, H, D, HD)) * scale                   # hd**-0.5 folded in
    w_k = nrm((L, H, D, HD))
    w_v = nrm((L, H, D, HD))
    # packed LN / bias vector blob rows: [ln1w, ln1b, ln2w, ln2b, bo, b2, -, -]
    vecs = jnp.zeros((L, 8, D), jnp.float32)
    vecs = vecs.at[:, 0, :].set(1.0).at[:, 2, :].set(1.0)
    params['stack'] = dict(
        w_qkv=jnp.stack([w_q, w_k, w_v], axis=1).astype(jnp.bfloat16),
        b_qkv=jnp.zeros((L, 3, H, 1, HD), jnp.float32),   # bq would carry scale too
        wo=nrm((L, H, HD, D)).astype(jnp.bfloat16),
        w1=nrm((L, D, FFN)).astype(jnp.bfloat16),
        w2=nrm((L, FFN, D)).astype(jnp.bfloat16),
        vecs=vecs,
        b1=jnp.zeros((L, 1, FFN), jnp.float32),
    )

    n_edge_type = VOCAB * VOCAB
    means = jax.random.uniform(next(kit), (K,), jnp.float32, 0.0, 3.0)
    stds = jax.random.uniform(next(kit), (K,), jnp.float32, 0.0, 3.0)
    istd = 1.0 / (jnp.abs(stds) + 1e-5)
    coef = istd * (1.0 / math.sqrt(2.0 * 3.14159))     # reference pi constant
    params['gbf'] = dict(
        mul=jnp.ones((n_edge_type,), jnp.float32),     # Embedding(n_edge_type, 1), init 1
        bias=jnp.zeros((n_edge_type,), jnp.float32),   # Embedding(n_edge_type, 1), init 0
        istd=istd.reshape(K, 1),
        mean_s=(means * istd).reshape(K, 1),
    )
    w1t = nrm((K, K))
    params['gbf_proj'] = dict(
        w1t_c=(w1t * coef.reshape(1, K)).astype(jnp.bfloat16),  # coef folded into columns
        b1=jnp.zeros((K, 1), jnp.float32),
        w2t=nrm((H, K)).astype(jnp.bfloat16),
        b2=jnp.zeros((H, 1), jnp.float32),
    )
    return params


# -----------------------------------------------------------------------------
# Full forward (mirrors UniMolModel.forward) — one jitted program.
# -----------------------------------------------------------------------------
@jax.jit
def _forward_core(params, src_tokens, src_distance, src_edge_type):
    pad = (src_tokens == PAD)

    # token embedding
    x = jnp.take(params['embed_tokens'], src_tokens, axis=0)       # (B, N, D)

    # graph attention bias from distances + edge types (Pallas kernel 1)
    bias_hm = gbf_attn_bias(src_distance, src_edge_type,
                            params['gbf'], params['gbf_proj'])      # (H, B, N, N)

    # ---- TransformerEncoderWithPair ----
    x = _layernorm(x, params['emb_ln_w'], params['emb_ln_b'])
    # padding (x mask + -inf key fill) handled inside the encoder kernel.
    x = encoder_stack(x, bias_hm, pad, params['stack'])              # Pallas kernel 2

    # final layer norm (post_ln=False -> applied)
    encoder_rep = _layernorm(x, params['final_ln_w'], params['final_ln_b'])
    return encoder_rep[:, 0, :]                                      # (B, D)


def unimol_forward(params, sample):
    inp = sample['input']
    rep = _forward_core(params, inp['src_tokens'], inp['src_distance'],
                        inp['src_edge_type'])
    return {
        'molecule_representation': rep,
        'smiles': inp['smiles'],
    }


# -----------------------------------------------------------------------------
if __name__ == "__main__":
    root = jax.random.PRNGKey(0)
    kp, kt, kd, kc = jax.random.split(root, 4)

    params = init_params(kp)

    # deterministic synthetic sample
    tokens = jax.random.randint(kt, (B, N), 1, VOCAB).astype(jnp.int32)
    tokens = tokens.at[:, 0].set(1)            # BOS-like token at position 0
    tokens = tokens.at[1, N - 2:].set(PAD)     # some padding in second sequence
    dist = jnp.abs(jax.random.normal(kd, (B, N, N), jnp.float32)) * 3.0
    dist = 0.5 * (dist + dist.transpose(0, 2, 1))
    edge_type = (tokens[:, :, None] * VOCAB + tokens[:, None, :]).astype(jnp.int32)
    coord = jax.random.normal(kc, (B, N, 3), jnp.float32)   # unused by forward compute

    sample = {'input': {
        'src_tokens': tokens,
        'src_distance': dist,
        'src_coord': coord,
        'src_edge_type': edge_type,
        'smiles': ['C1=CC=CC=C1', 'CCO'],
    }}

    out = unimol_forward(params, sample)
    rep = jax.block_until_ready(out['molecule_representation'])
    assert rep.shape == (B, D) and bool(jnp.all(jnp.isfinite(rep)))
    print("KERNEL_OK")
</pallas_src>

<mosaic_0001>
module attributes {stable_mosaic.version = 11 : i64} {
  func.func @_gbf_bias_kernel(%arg0: i32, %arg1: memref<1x128xf32, #tpu.memory_space<vmem>>, %arg2: memref<1x128xf32, #tpu.memory_space<vmem>>, %arg3: memref<1x128xf32, #tpu.memory_space<vmem>>, %arg4: memref<128x1xf32, #tpu.memory_space<vmem>>, %arg5: memref<128x1xf32, #tpu.memory_space<vmem>>, %arg6: memref<128x128xbf16, #tpu.memory_space<vmem>>, %arg7: memref<128x1xf32, #tpu.memory_space<vmem>>, %arg8: memref<4x128xbf16, #tpu.memory_space<vmem>>, %arg9: memref<4x1xf32, #tpu.memory_space<vmem>>, %arg10: memref<4x128xf32, #tpu.memory_space<vmem>>) attributes {dimension_semantics = [#tpu.dimension_semantics<parallel>], iteration_bounds = array<i64: 1>, scalar_prefetch = 0 : i64, scratch_operands = 0 : i64, tpu.core_type = #tpu.core_type<tc>, window_params = [{transform_indices = @transform_0, window_bounds = array<i64: 1, 128>}, {transform_indices = @transform_1, window_bounds = array<i64: 1, 128>}, {transform_indices = @transform_2, window_bounds = array<i64: 1, 128>}, {pipeline_mode = #tpu.pipeline_mode<synchronous>, transform_indices = @transform_3, window_bounds = array<i64: 128, 1>}, {pipeline_mode = #tpu.pipeline_mode<synchronous>, transform_indices = @transform_4, window_bounds = array<i64: 128, 1>}, {pipeline_mode = #tpu.pipeline_mode<synchronous>, transform_indices = @transform_5, window_bounds = array<i64: 128, 128>}, {pipeline_mode = #tpu.pipeline_mode<synchronous>, transform_indices = @transform_6, window_bounds = array<i64: 128, 1>}, {pipeline_mode = #tpu.pipeline_mode<synchronous>, transform_indices = @transform_7, window_bounds = array<i64: 4, 128>}, {pipeline_mode = #tpu.pipeline_mode<synchronous>, transform_indices = @transform_8, window_bounds = array<i64: 4, 1>}, {transform_indices = @transform_9, window_bounds = array<i64: 4, 128>}]} {
    %c0 = arith.constant 0 : index
    %c0_0 = arith.constant 0 : index
    %0 = vector.load %arg2[%c0, %c0_0] : memref<1x128xf32, #tpu.memory_space<vmem>>, vector<1x128xf32>
    %c0_1 = arith.constant 0 : index
    %c0_2 = arith.constant 0 : index
    %1 = vector.load %arg1[%c0_1, %c0_2] : memref<1x128xf32, #tpu.memory_space<vmem>>, vector<1x128xf32>
    %2 = arith.mulf %0, %1 : vector<1x128xf32>
    %c0_3 = arith.constant 0 : index
    %c0_4 = arith.constant 0 : index
    %3 = vector.load %arg3[%c0_3, %c0_4] : memref<1x128xf32, #tpu.memory_space<vmem>>, vector<1x128xf32>
    %4 = arith.addf %2, %3 : vector<1x128xf32>
    %c0_5 = arith.constant 0 : index
    %c0_6 = arith.constant 0 : index
    %5 = vector.load %arg5[%c0_5, %c0_6] : memref<128x1xf32, #tpu.memory_space<vmem>>, vector<128x1xf32>
    %6 = vector.broadcast %4 : vector<1x128xf32> to vector<128x128xf32>
    %7 = vector.broadcast %5 : vector<128x1xf32> to vector<128x128xf32>
    %8 = arith.mulf %6, %7 : vector<128x128xf32>
    %c0_7 = arith.constant 0 : index
    %c0_8 = arith.constant 0 : index
    %9 = vector.load %arg4[%c0_7, %c0_8] : memref<128x1xf32, #tpu.memory_space<vmem>>, vector<128x1xf32>
    %10 = vector.broadcast %9 : vector<128x1xf32> to vector<128x128xf32>
    %11 = arith.subf %8, %10 : vector<128x128xf32>
    %12 = arith.mulf %11, %11 : vector<128x128xf32>
    %cst = arith.constant -5.000000e-01 : f32
    %13 = vector.broadcast %cst : f32 to vector<128x128xf32>
    %14 = arith.mulf %13, %12 : vector<128x128xf32>
    %15 = math.exp %14 : vector<128x128xf32>
    %c0_9 = arith.constant 0 : index
    %c0_10 = arith.constant 0 : index
    %16 = vector.load %arg6[%c0_9, %c0_10] : memref<128x128xbf16, #tpu.memory_space<vmem>>, vector<128x128xbf16>
    %17 = arith.truncf %15 : vector<128x128xf32> to vector<128x128xbf16>
    %cst_11 = arith.constant dense<0.000000e+00> : vector<128x128xf32>
    %18 = tpu.matmul %16, %17, %cst_11 {dimension_numbers = #tpu.dot_dimension_numbers<[1], [0], [0], [1], [0, 0, 1, 1], [], []>} : vector<128x128xbf16>, vector<128x128xbf16>, vector<128x128xf32> -> vector<128x128xf32>
    %c0_12 = arith.constant 0 : index
    %c0_13 = arith.constant 0 : index
    %19 = vector.load %arg7[%c0_12, %c0_13] : memref<128x1xf32, #tpu.memory_space<vmem>>, vector<128x1xf32>
    %20 = vector.broadcast %19 : vector<128x1xf32> to vector<128x128xf32>
    %21 = arith.addf %18, %20 : vector<128x128xf32>
    %cst_14 = arith.constant 5.000000e-01 : f32
    %22 = vector.broadcast %cst_14 : f32 to vector<128x128xf32>
    %23 = arith.mulf %22, %21 : vector<128x128xf32>
    %cst_15 = arith.constant 0.707106769 : f32
    %24 = vector.broadcast %cst_15 : f32 to vector<128x128xf32>
    %25 = arith.mulf %21, %24 : vector<128x128xf32>
    %26 = math.erf %25 : vector<128x128xf32>
    %cst_16 = arith.constant 1.000000e+00 : f32
    %27 = vector.broadcast %cst_16 : f32 to vector<128x128xf32>
    %28 = arith.addf %27, %26 : vector<128x128xf32>
    %29 = arith.mulf %23, %28 : vector<128x128xf32>
    %c0_17 = arith.constant 0 : index
    %c0_18 = arith.constant 0 : index
    %30 = vector.load %arg8[%c0_17, %c0_18] : memref<4x128xbf16, #tpu.memory_space<vmem>>, vector<4x128xbf16>
    %31 = arith.truncf %29 : vector<128x128xf32> to vector<128x128xbf16>
    %cst_19 = arith.constant dense<0.000000e+00> : vector<4x128xf32>
    %32 = tpu.matmul %30, %31, %cst_19 {dimension_numbers = #tpu.dot_dimension_numbers<[1], [0], [0], [1], [0, 0, 1, 1], [], []>} : vector<4x128xbf16>, vector<128x128xbf16>, vector<4x128xf32> -> vector<4x128xf32>
    %c0_20 = arith.constant 0 : index
    %c0_21 = arith.constant 0 : index
    %33 = vector.load %arg9[%c0_20, %c0_21] : memref<4x1xf32, #tpu.memory_space<vmem>>, vector<4x1xf32>
    %34 = vector.broadcast %33 : vector<4x1xf32> to vector<4x128xf32>
    %35 = arith.addf %32, %34 : vector<4x128xf32>
    %c0_22 = arith.constant 0 : index
    %c0_23 = arith.constant 0 : index
    %36 = vector.load %arg10[%c0_22, %c0_23] : memref<4x128xf32, #tpu.memory_space<vmem>>, vector<4x128xf32>
    tpu.vector_store %arg10[%c0_22, %c0_23], %35 {strides = array<i32>} : memref<4x128xf32, #tpu.memory_space<vmem>>, vector<4x128xf32>,
    return
  }
  func.func @transform_0(%arg0: i32) -> (i32, i32) {
    %c0_i32 = arith.constant 0 : i32
    %c0_i32_0 = arith.constant 0 : i32
    return %c0_i32, %arg0 : i32, i32
  }
  func.func @transform_1(%arg0: i32) -> (i32, i32) {
    %c0_i32 = arith.constant 0 : i32
    %c0_i32_0 = arith.constant 0 : i32
    return %c0_i32, %arg0 : i32, i32
  }
  func.func @transform_2(%arg0: i32) -> (i32, i32) {
    %c0_i32 = arith.constant 0 : i32
    %c0_i32_0 = arith.constant 0 : i32
    return %c0_i32, %arg0 : i32, i32
  }
  func.func @transform_3(%arg0: i32) -> (i32, i32) {
    %c0_i32 = arith.constant 0 : i32
    %c0_i32_0 = arith.constant 0 : i32
    %c0_i32_1 = arith.constant 0 : i32
    return %c0_i32, %c0_i32_0 : i32, i32
  }
  func.func @transform_4(%arg0: i32) -> (i32, i32) {
    %c0_i32 = arith.constant 0 : i32
    %c0_i32_0 = arith.constant 0 : i32
    %c0_i32_1 = arith.constant 0 : i32
    return %c0_i32, %c0_i32_0 : i32, i32
  }
  func.func @transform_5(%arg0: i32) -> (i32, i32) {
    %c0_i32 = arith.constant 0 : i32
    %c0_i32_0 = arith.constant 0 : i32
    %c0_i32_1 = arith.constant 0 : i32
    return %c0_i32, %c0_i32_0 : i32, i32
  }
  func.func @transform_6(%arg0: i32) -> (i32, i32) {
    %c0_i32 = arith.constant 0 : i32
    %c0_i32_0 = arith.constant 0 : i32
    %c0_i32_1 = arith.constant 0 : i32
    return %c0_i32, %c0_i32_0 : i32, i32
  }
  func.func @transform_7(%arg0: i32) -> (i32, i32) {
    %c0_i32 = arith.constant 0 : i32
    %c0_i32_0 = arith.constant 0 : i32
    %c0_i32_1 = arith.constant 0 : i32
    return %c0_i32, %c0_i32_0 : i32, i32
  }
  func.func @transform_8(%arg0: i32) -> (i32, i32) {
    %c0_i32 = arith.constant 0 : i32
    %c0_i32_0 = arith.constant 0 : i32
    %c0_i32_1 = arith.constant 0 : i32
    return %c0_i32, %c0_i32_0 : i32, i32
  }
  func.func @transform_9(%arg0: i32) -> (i32, i32) {
    %c0_i32 = arith.constant 0 : i32
    %c0_i32_0 = arith.constant 0 : i32
    return %c0_i32, %arg0 : i32, i32
  }
}

module attributes {stable_mosaic.version = 11 : i64} {
  func.func @_encoder_stack_kernel(%arg0: i32, %arg1: i32, %arg2: memref<1x8x32xf32, #tpu.memory_space<vmem>>, %arg3: memref<4x1x8x8xf32, #tpu.memory_space<vmem>>, %arg4: memref<1x8x1xf32, #tpu.memory_space<vmem>>, %arg5: memref<1x1x1x8xf32, #tpu.memory_space<vmem>>, %arg6: memref<1x3x4x32x8xbf16, #tpu.memory_space<vmem>>, %arg7: memref<1x3x4x1x8xf32, #tpu.memory_space<vmem>>, %arg8: memref<1x4x8x32xbf16, #tpu.memory_space<vmem>>, %arg9: memref<1x32x64xbf16, #tpu.memory_space<vmem>>, %arg10: memref<1x64x32xbf16, #tpu.memory_space<vmem>>, %arg11: memref<1x8x32xf32, #tpu.memory_space<vmem>>, %arg12: memref<1x1x64xf32, #tpu.memory_space<vmem>>, %arg13: memref<1x8x32xf32, #tpu.memory_space<vmem>>, %arg14: memref<4x8x8xf32, #tpu.memory_space<vmem>>) attributes {dimension_semantics = [#tpu.dimension_semantics<parallel>, #tpu.dimension_semantics<arbitrary>], iteration_bounds = array<i64: 2, 2>, scalar_prefetch = 0 : i64, scratch_operands = 1 : i64, tpu.core_type = #tpu.core_type<tc>, window_params = [{transform_indices = @transform_0, window_bounds = array<i64: 1, 8, 32>}, {transform_indices = @transform_1, window_bounds = array<i64: 4, 1, 8, 8>}, {transform_indices = @transform_2, window_bounds = array<i64: 1, 8, 1>}, {transform_indices = @transform_3, window_bounds = array<i64: 1, 1, 1, 8>}, {transform_indices = @transform_4, window_bounds = array<i64: 1, 3, 4, 32, 8>}, {transform_indices = @transform_5, window_bounds = array<i64: 1, 3, 4, 1, 8>}, {transform_indices = @transform_6, window_bounds = array<i64: 1, 4, 8, 32>}, {transform_indices = @transform_7, window_bounds = array<i64: 1, 32, 64>}, {transform_indices = @transform_8, window_bounds = array<i64: 1, 64, 32>}, {transform_indices = @transform_9, window_bounds = array<i64: 1, 8, 32>}, {transform_indices = @transform_10, window_bounds = array<i64: 1, 1, 64>}, {transform_indices = @transform_11, window_bounds = array<i64: 1, 8, 32>}]} {
    %c0_i32 = arith.constant 0 : i32
    %0 = arith.cmpi eq, %arg1, %c0_i32 : i32
    %1 = arith.extui %0 : i1 to i32
    %c0_i32_0 = arith.constant 0 : i32
    %2 = arith.cmpi ne, %1, %c0_i32_0 : i32
    scf.if %2 {
      %c0_61 = arith.constant 0 : index
      %c0_62 = arith.constant 0 : index
      %c0_63 = arith.constant 0 : index
      %142 = vector.load %arg2[%c0_61, %c0_62, %c0_63] : memref<1x8x32xf32, #tpu.memory_space<vmem>>, vector<1x8x32xf32>
      %143 = vector.shape_cast %142 : vector<1x8x32xf32> to vector<8x32xf32>
      %c0_64 = arith.constant 0 : index
      %c0_65 = arith.constant 0 : index
      %c0_66 = arith.constant 0 : index
      %144 = vector.load %arg4[%c0_64, %c0_65, %c0_66] : memref<1x8x1xf32, #tpu.memory_space<vmem>>, vector<1x8x1xf32>
      %145 = vector.shape_cast %144 : vector<1x8x1xf32> to vector<8x1xf32>
      %cst_67 = arith.constant 1.000000e+00 : f32
      %146 = vector.broadcast %cst_67 : f32 to vector<8x1xf32>
      %147 = arith.subf %146, %145 : vector<8x1xf32>
      %148 = vector.broadcast %147 : vector<8x1xf32> to vector<8x32xf32>
      %149 = arith.mulf %143, %148 : vector<8x32xf32>
      %c0_68 = arith.constant 0 : index
      %c0_69 = arith.constant 0 : index
      %c0_70 = arith.constant 0 : index
      %150 = vector.load %arg13[%c0_68, %c0_69, %c0_70] : memref<1x8x32xf32, #tpu.memory_space<vmem>>, vector<1x8x32xf32>
      %151 = vector.shape_cast %150 : vector<1x8x32xf32> to vector<8x32xf32>
      %152 = vector.shape_cast %149 : vector<8x32xf32> to vector<1x8x32xf32>
      tpu.vector_store %arg13[%c0_68, %c0_69, %c0_70], %152 {strides = array<i32>} : memref<1x8x32xf32, #tpu.memory_space<vmem>>, vector<1x8x32xf32>,
      %c0_71 = arith.constant 0 : index
      %c0_72 = arith.constant 0 : index
      %c0_73 = arith.constant 0 : index
      %c0_74 = arith.constant 0 : index
      %153 = vector.load %arg3[%c0_71, %c0_72, %c0_73, %c0_74] : memref<4x1x8x8xf32, #tpu.memory_space<vmem>>, vector<4x1x8x8xf32>
      %154 = vector.shape_cast %153 : vector<4x1x8x8xf32> to vector<4x8x8xf32>
      %c0_75 = arith.constant 0 : index
      %c0_76 = arith.constant 0 : index
      %c0_77 = arith.constant 0 : index
      %c0_78 = arith.constant 0 : index
      %155 = vector.load %arg5[%c0_75, %c0_76, %c0_77, %c0_78] : memref<1x1x1x8xf32, #tpu.memory_space<vmem>>, vector<1x1x1x8xf32>
      %156 = vector.shape_cast %155 : vector<1x1x1x8xf32> to vector<1x1x8xf32>
      %cst_79 = arith.constant 0.000000e+00 : f32
      %157 = vector.broadcast %cst_79 : f32 to vector<1x1x8xf32>
      %158 = arith.cmpf ogt, %156, %157 : vector<1x1x8xf32>
      %cst_80 = arith.constant 0xFF800000 : f32
      %159 = vector.shape_cast %158 : vector<1x1x8xi1> to vector<1x1x8xi1>
      %160 = vector.broadcast %159 : vector<1x1x8xi1> to vector<4x8x8xi1>
      %161 = vector.broadcast %cst_80 : f32 to vector<4x8x8xf32>
      %162 = arith.select %160, %161, %154 : vector<4x8x8xi1>, vector<4x8x8xf32>
      %c0_81 = arith.constant 0 : index
      %c0_82 = arith.constant 0 : index
      %c0_83 = arith.constant 0 : index
      %163 = vector.load %arg14[%c0_81, %c0_82, %c0_83] : memref<4x8x8xf32, #tpu.memory_space<vmem>>, vector<4x8x8xf32>
      tpu.vector_store %arg14[%c0_81, %c0_82, %c0_83], %162 {strides = array<i32>} : memref<4x8x8xf32, #tpu.memory_space<vmem>>, vector<4x8x8xf32>,
    } else {
    }
    %c0 = arith.constant 0 : index
    %c0_1 = arith.constant 0 : index
    %c0_2 = arith.constant 0 : index
    %3 = vector.load %arg13[%c0, %c0_1, %c0_2] : memref<1x8x32xf32, #tpu.memory_space<vmem>>, vector<1x8x32xf32>
    %4 = vector.shape_cast %3 : vector<1x8x32xf32> to vector<8x32xf32>
    %c0_3 = arith.constant 0 : index
    %c0_4 = arith.constant 0 : index
    %c0_5 = arith.constant 0 : index
    %5 = vector.load %arg14[%c0_3, %c0_4, %c0_5] : memref<4x8x8xf32, #tpu.memory_space<vmem>>, vector<4x8x8xf32>
    %c0_6 = arith.constant 0 : index
    %c0_7 = arith.constant 0 : index
    %c0_8 = arith.constant 0 : index
    %6 = vector.load %arg11[%c0_6, %c0_7, %c0_8] : memref<1x8x32xf32, #tpu.memory_space<vmem>>, vector<1x8x32xf32>
    %7 = vector.shape_cast %6 : vector<1x8x32xf32> to vector<8x32xf32>
    %8 = vector.extract_strided_slice %7 {offsets = [0, 0], sizes = [1, 32], strides = [1, 1]} : vector<8x32xf32> to vector<1x32xf32>
    %9 = vector.extract_strided_slice %7 {offsets = [1, 0], sizes = [1, 32], strides = [1, 1]} : vector<8x32xf32> to vector<1x32xf32>
    %10 = vector.extract_strided_slice %7 {offsets = [2, 0], sizes = [1, 32], strides = [1, 1]} : vector<8x32xf32> to vector<1x32xf32>
    %11 = vector.extract_strided_slice %7 {offsets = [3, 0], sizes = [1, 32], strides = [1, 1]} : vector<8x32xf32> to vector<1x32xf32>
    %12 = vector.extract_strided_slice %7 {offsets = [4, 0], sizes = [1, 32], strides = [1, 1]} : vector<8x32xf32> to vector<1x32xf32>
    %13 = vector.extract_strided_slice %7 {offsets = [5, 0], sizes = [1, 32], strides = [1, 1]} : vector<8x32xf32> to vector<1x32xf32>
    %cst = arith.constant dense<0.000000e+00> : vector<8xf32>
    %14 = vector.multi_reduction <add>, %4, %cst [1] : vector<8x32xf32> to vector<8xf32>
    %15 = vector.shape_cast %14 : vector<8xf32> to vector<8x1xf32>
    %cst_9 = arith.constant 3.200000e+01 : f32
    %16 = vector.broadcast %cst_9 : f32 to vector<8x1xf32>
    %17 = arith.divf %15, %16 : vector<8x1xf32>
    %18 = vector.broadcast %17 : vector<8x1xf32> to vector<8x32xf32>
    %19 = arith.subf %4, %18 : vector<8x32xf32>
    %20 = vector.broadcast %17 : vector<8x1xf32> to vector<8x32xf32>
    %21 = arith.subf %4, %20 : vector<8x32xf32>
    %22 = arith.mulf %19, %21 : vector<8x32xf32>
    %cst_10 = arith.constant dense<0.000000e+00> : vector<8xf32>
    %23 = vector.multi_reduction <add>, %22, %cst_10 [1] : vector<8x32xf32> to vector<8xf32>
    %24 = vector.shape_cast %23 : vector<8xf32> to vector<8x1xf32>
    %cst_11 = arith.constant 3.200000e+01 : f32
    %25 = vector.broadcast %cst_11 : f32 to vector<8x1xf32>
    %26 = arith.divf %24, %25 : vector<8x1xf32>
    %27 = vector.broadcast %17 : vector<8x1xf32> to vector<8x32xf32>
    %28 = arith.subf %4, %27 : vector<8x32xf32>
    %cst_12 = arith.constant 9.99999974E-6 : f32
    %29 = vector.broadcast %cst_12 : f32 to vector<8x1xf32>
    %30 = arith.addf %26, %29 : vector<8x1xf32>
    %31 = math.rsqrt %30 : vector<8x1xf32>
    %32 = vector.broadcast %31 : vector<8x1xf32> to vector<8x32xf32>
    %33 = arith.mulf %28, %32 : vector<8x32xf32>
    %34 = vector.broadcast %8 : vector<1x32xf32> to vector<8x32xf32>
    %35 = arith.mulf %33, %34 : vector<8x32xf32>
    %36 = vector.broadcast %9 : vector<1x32xf32> to vector<8x32xf32>
    %37 = arith.addf %35, %36 : vector<8x32xf32>
    %38 = arith.truncf %37 : vector<8x32xf32> to vector<8x32xbf16>
    %39 = vector.shape_cast %38 : vector<8x32xbf16> to vector<1x8x32xbf16>
    %40 = vector.broadcast %39 : vector<1x8x32xbf16> to vector<4x8x32xbf16>
    %c0_13 = arith.constant 0 : index
    %c0_14 = arith.constant 0 : index
    %c0_15 = arith.constant 0 : index
    %c0_16 = arith.constant 0 : index
    %c0_17 = arith.constant 0 : index
    %41 = vector.load %arg6[%c0_13, %c0_14, %c0_15, %c0_16, %c0_17] : memref<1x3x4x32x8xbf16, #tpu.memory_space<vmem>>, vector<1x3x4x32x8xbf16>
    %42 = vector.shape_cast %41 : vector<1x3x4x32x8xbf16> to vector<3x4x32x8xbf16>
    %c0_18 = arith.constant 0 : index
    %c0_19 = arith.constant 0 : index
    %c0_20 = arith.constant 0 : index
    %c0_21 = arith.constant 0 : index
    %c0_22 = arith.constant 0 : index
    %43 = vector.load %arg7[%c0_18, %c0_19, %c0_20, %c0_21, %c0_22] : memref<1x3x4x1x8xf32, #tpu.memory_space<vmem>>, vector<1x3x4x1x8xf32>
    %44 = vector.shape_cast %43 : vector<1x3x4x1x8xf32> to vector<3x4x1x8xf32>
    %45 = vector.extract_strided_slice %42 {offsets = [0, 0, 0, 0], sizes = [1, 4, 32, 8], strides = [1, 1, 1, 1]} : vector<3x4x32x8xbf16> to vector<1x4x32x8xbf16>
    %46 = vector.shape_cast %45 : vector<1x4x32x8xbf16> to vector<4x32x8xbf16>
    "tpu.trace_start"() <{level = 10 : i32, message = "hnd,hdc->hnc"}> : () -> ()
    %cst_23 = arith.constant dense<0.000000e+00> : vector<4x8x8xf32>
    %47 = tpu.matmul %40, %46, %cst_23 {dimension_numbers = #tpu.dot_dimension_numbers<[2], [1], [1], [2], [0, 0, 0, 1, 1, 2], [0], [0]>} : vector<4x8x32xbf16>, vector<4x32x8xbf16>, vector<4x8x8xf32> -> vector<4x8x8xf32>
    "tpu.trace_stop"() : () -> ()
    %48 = vector.extract_strided_slice %44 {offsets = [0, 0, 0, 0], sizes = [1, 4, 1, 8], strides = [1, 1, 1, 1]} : vector<3x4x1x8xf32> to vector<1x4x1x8xf32>
    %49 = vector.shape_cast %48 : vector<1x4x1x8xf32> to vector<4x1x8xf32>
    %50 = vector.broadcast %49 : vector<4x1x8xf32> to vector<4x8x8xf32>
    %51 = arith.addf %47, %50 : vector<4x8x8xf32>
    %52 = vector.extract_strided_slice %42 {offsets = [1, 0, 0, 0], sizes = [1, 4, 32, 8], strides = [1, 1, 1, 1]} : vector<3x4x32x8xbf16> to vector<1x4x32x8xbf16>
    %53 = vector.shape_cast %52 : vector<1x4x32x8xbf16> to vector<4x32x8xbf16>
    "tpu.trace_start"() <{level = 10 : i32, message = "hnd,hdc->hnc"}> : () -> ()
    %cst_24 = arith.constant dense<0.000000e+00> : vector<4x8x8xf32>
    %54 = tpu.matmul %40, %53, %cst_24 {dimension_numbers = #tpu.dot_dimension_numbers<[2], [1], [1], [2], [0, 0, 0, 1, 1, 2], [0], [0]>} : vector<4x8x32xbf16>, vector<4x32x8xbf16>, vector<4x8x8xf32> -> vector<4x8x8xf32>
    "tpu.trace_stop"() : () -> ()
    %55 = vector.extract_strided_slice %44 {offsets = [1, 0, 0, 0], sizes = [1, 4, 1, 8], strides = [1, 1, 1, 1]} : vector<3x4x1x8xf32> to vector<1x4x1x8xf32>
    %56 = vector.shape_cast %55 : vector<1x4x1x8xf32> to vector<4x1x8xf32>
    %57 = vector.broadcast %56 : vector<4x1x8xf32> to vector<4x8x8xf32>
    %58 = arith.addf %54, %57 : vector<4x8x8xf32>
    %59 = vector.extract_strided_slice %42 {offsets = [2, 0, 0, 0], sizes = [1, 4, 32, 8], strides = [1, 1, 1, 1]} : vector<3x4x32x8xbf16> to vector<1x4x32x8xbf16>
    %60 = vector.shape_cast %59 : vector<1x4x32x8xbf16> to vector<4x32x8xbf16>
    "tpu.trace_start"() <{level = 10 : i32, message = "hnd,hdc->hnc"}> : () -> ()
    %cst_25 = arith.constant dense<0.000000e+00> : vector<4x8x8xf32>
    %61 = tpu.matmul %40, %60, %cst_25 {dimension_numbers = #tpu.dot_dimension_numbers<[2], [1], [1], [2], [0, 0, 0, 1, 1, 2], [0], [0]>} : vector<4x8x32xbf16>, vector<4x32x8xbf16>, vector<4x8x8xf32> -> vector<4x8x8xf32>
    "tpu.trace_stop"() : () -> ()
    %62 = vector.extract_strided_slice %44 {offsets = [2, 0, 0, 0], sizes = [1, 4, 1, 8], strides = [1, 1, 1, 1]} : vector<3x4x1x8xf32> to vector<1x4x1x8xf32>
    %63 = vector.shape_cast %62 : vector<1x4x1x8xf32> to vector<4x1x8xf32>
    %64 = vector.broadcast %63 : vector<4x1x8xf32> to vector<4x8x8xf32>
    %65 = arith.addf %61, %64 : vector<4x8x8xf32>
    %66 = arith.truncf %51 : vector<4x8x8xf32> to vector<4x8x8xbf16>
    %67 = arith.truncf %58 : vector<4x8x8xf32> to vector<4x8x8xbf16>
    "tpu.trace_start"() <{level = 10 : i32, message = "hqc,hkc->hqk"}> : () -> ()
    %cst_26 = arith.constant dense<0.000000e+00> : vector<4x8x8xf32>
    %68 = tpu.matmul %66, %67, %cst_26 {dimension_numbers = #tpu.dot_dimension_numbers<[2], [2], [1], [1], [0, 0, 0, 1, 1, 1], [0], [0]>} : vector<4x8x8xbf16>, vector<4x8x8xbf16>, vector<4x8x8xf32> -> vector<4x8x8xf32>
    "tpu.trace_stop"() : () -> ()
    %69 = arith.addf %68, %5 : vector<4x8x8xf32>
    %c0_27 = arith.constant 0 : index
    %c0_28 = arith.constant 0 : index
    %c0_29 = arith.constant 0 : index
    %70 = vector.load %arg14[%c0_27, %c0_28, %c0_29] : memref<4x8x8xf32, #tpu.memory_space<vmem>>, vector<4x8x8xf32>
    tpu.vector_store %arg14[%c0_27, %c0_28, %c0_29], %69 {strides = array<i32>} : memref<4x8x8xf32, #tpu.memory_space<vmem>>, vector<4x8x8xf32>,
    %cst_30 = arith.constant dense<0xFF800000> : vector<4x8xf32>
    %71 = vector.multi_reduction <maximumf>, %69, %cst_30 [2] : vector<4x8x8xf32> to vector<4x8xf32>
    %72 = vector.shape_cast %71 : vector<4x8xf32> to vector<4x8x1xf32>
    %73 = vector.broadcast %72 : vector<4x8x1xf32> to vector<4x8x8xf32>
    %74 = arith.subf %69, %73 : vector<4x8x8xf32>
    %75 = math.exp %74 : vector<4x8x8xf32>
    %cst_31 = arith.constant dense<0.000000e+00> : vector<4x8xf32>
    %76 = vector.multi_reduction <add>, %75, %cst_31 [2] : vector<4x8x8xf32> to vector<4x8xf32>
    %77 = vector.shape_cast %76 : vector<4x8xf32> to vector<4x8x1xf32>
    %78 = tpu.reciprocal %77 {approx = true} : vector<4x8x1xf32> -> vector<4x8x1xf32>
    %79 = vector.broadcast %78 : vector<4x8x1xf32> to vector<4x8x8xf32>
    %80 = arith.mulf %75, %79 : vector<4x8x8xf32>
    %81 = arith.truncf %80 : vector<4x8x8xf32> to vector<4x8x8xbf16>
    %82 = arith.truncf %65 : vector<4x8x8xf32> to vector<4x8x8xbf16>
    "tpu.trace_start"() <{level = 10 : i32, message = "hqk,hkc->hqc"}> : () -> ()
    %cst_32 = arith.constant dense<0.000000e+00> : vector<4x8x8xf32>
    %83 = tpu.matmul %81, %82, %cst_32 {dimension_numbers = #tpu.dot_dimension_numbers<[2], [1], [1], [2], [0, 0, 0, 1, 1, 2], [0], [0]>} : vector<4x8x8xbf16>, vector<4x8x8xbf16>, vector<4x8x8xf32> -> vector<4x8x8xf32>
    "tpu.trace_stop"() : () -> ()
    %84 = arith.truncf %83 : vector<4x8x8xf32> to vector<4x8x8xbf16>
    %c0_33 = arith.constant 0 : index
    %c0_34 = arith.constant 0 : index
    %c0_35 = arith.constant 0 : index
    %c0_36 = arith.constant 0 : index
    %85 = vector.load %arg8[%c0_33, %c0_34, %c0_35, %c0_36] : memref<1x4x8x32xbf16, #tpu.memory_space<vmem>>, vector<1x4x8x32xbf16>
    %86 = vector.shape_cast %85 : vector<1x4x8x32xbf16> to vector<4x8x32xbf16>
    "tpu.trace_start"() <{level = 10 : i32, message = "hnc,hcd->hnd"}> : () -> ()
    %cst_37 = arith.constant dense<0.000000e+00> : vector<4x8x32xf32>
    %87 = tpu.matmul %84, %86, %cst_37 {dimension_numbers = #tpu.dot_dimension_numbers<[2], [1], [1], [2], [0, 0, 0, 1, 1, 2], [0], [0]>} : vector<4x8x8xbf16>, vector<4x8x32xbf16>, vector<4x8x32xf32> -> vector<4x8x32xf32>
    "tpu.trace_stop"() : () -> ()
    %cst_38 = arith.constant dense<0.000000e+00> : vector<8x32xf32>
    %88 = vector.multi_reduction <add>, %87, %cst_38 [0] : vector<4x8x32xf32> to vector<8x32xf32>
    %89 = arith.addf %4, %88 : vector<8x32xf32>
    %90 = vector.broadcast %12 : vector<1x32xf32> to vector<8x32xf32>
    %91 = arith.addf %89, %90 : vector<8x32xf32>
    %cst_39 = arith.constant dense<0.000000e+00> : vector<8xf32>
    %92 = vector.multi_reduction <add>, %91, %cst_39 [1] : vector<8x32xf32> to vector<8xf32>
    %93 = vector.shape_cast %92 : vector<8xf32> to vector<8x1xf32>
    %cst_40 = arith.constant 3.200000e+01 : f32
    %94 = vector.broadcast %cst_40 : f32 to vector<8x1xf32>
    %95 = arith.divf %93, %94 : vector<8x1xf32>
    %96 = vector.broadcast %95 : vector<8x1xf32> to vector<8x32xf32>
    %97 = arith.subf %91, %96 : vector<8x32xf32>
    %98 = vector.broadcast %95 : vector<8x1xf32> to vector<8x32xf32>
    %99 = arith.subf %91, %98 : vector<8x32xf32>
    %100 = arith.mulf %97, %99 : vector<8x32xf32>
    %cst_41 = arith.constant dense<0.000000e+00> : vector<8xf32>
    %101 = vector.multi_reduction <add>, %100, %cst_41 [1] : vector<8x32xf32> to vector<8xf32>
    %102 = vector.shape_cast %101 : vector<8xf32> to vector<8x1xf32>
    %cst_42 = arith.constant 3.200000e+01 : f32
    %103 = vector.broadcast %cst_42 : f32 to vector<8x1xf32>
    %104 = arith.divf %102, %103 : vector<8x1xf32>
    %105 = vector.broadcast %95 : vector<8x1xf32> to vector<8x32xf32>
    %106 = arith.subf %91, %105 : vector<8x32xf32>
    %cst_43 = arith.constant 9.99999974E-6 : f32
    %107 = vector.broadcast %cst_43 : f32 to vector<8x1xf32>
    %108 = arith.addf %104, %107 : vector<8x1xf32>
    %109 = math.rsqrt %108 : vector<8x1xf32>
    %110 = vector.broadcast %109 : vector<8x1xf32> to vector<8x32xf32>
    %111 = arith.mulf %106, %110 : vector<8x32xf32>
    %112 = vector.broadcast %10 : vector<1x32xf32> to vector<8x32xf32>
    %113 = arith.mulf %111, %112 : vector<8x32xf32>
    %114 = vector.broadcast %11 : vector<1x32xf32> to vector<8x32xf32>
    %115 = arith.addf %113, %114 : vector<8x32xf32>
    %116 = arith.truncf %115 : vector<8x32xf32> to vector<8x32xbf16>
    %c0_44 = arith.constant 0 : index
    %c0_45 = arith.constant 0 : index
    %c0_46 = arith.constant 0 : index
    %117 = vector.load %arg9[%c0_44, %c0_45, %c0_46] : memref<1x32x64xbf16, #tpu.memory_space<vmem>>, vector<1x32x64xbf16>
    %118 = vector.shape_cast %117 : vector<1x32x64xbf16> to vector<32x64xbf16>
    %cst_47 = arith.constant dense<0.000000e+00> : vector<8x64xf32>
    %119 = tpu.matmul %116, %118, %cst_47 {dimension_numbers = #tpu.dot_dimension_numbers<[1], [0], [0], [1], [0, 0, 1, 1], [], []>} : vector<8x32xbf16>, vector<32x64xbf16>, vector<8x64xf32> -> vector<8x64xf32>
    %c0_48 = arith.constant 0 : index
    %c0_49 = arith.constant 0 : index
    %c0_50 = arith.constant 0 : index
    %120 = vector.load %arg12[%c0_48, %c0_49, %c0_50] : memref<1x1x64xf32, #tpu.memory_space<vmem>>, vector<1x1x64xf32>
    %121 = vector.shape_cast %120 : vector<1x1x64xf32> to vector<1x64xf32>
    %122 = vector.broadcast %121 : vector<1x64xf32> to vector<8x64xf32>
    %123 = arith.addf %119, %122 : vector<8x64xf32>
    %cst_51 = arith.constant 5.000000e-01 : f32
    %124 = vector.broadcast %cst_51 : f32 to vector<8x64xf32>
    %125 = arith.mulf %124, %123 : vector<8x64xf32>
    %cst_52 = arith.constant 0.707106769 : f32
    %126 = vector.broadcast %cst_52 : f32 to vector<8x64xf32>
    %127 = arith.mulf %123, %126 : vector<8x64xf32>
    %128 = math.erf %127 : vector<8x64xf32>
    %cst_53 = arith.constant 1.000000e+00 : f32
    %129 = vector.broadcast %cst_53 : f32 to vector<8x64xf32>
    %130 = arith.addf %129, %128 : vector<8x64xf32>
    %131 = arith.mulf %125, %130 : vector<8x64xf32>
    %132 = arith.truncf %131 : vector<8x64xf32> to vector<8x64xbf16>
    %c0_54 = arith.constant 0 : index
    %c0_55 = arith.constant 0 : index
    %c0_56 = arith.constant 0 : index
    %133 = vector.load %arg10[%c0_54, %c0_55, %c0_56] : memref<1x64x32xbf16, #tpu.memory_space<vmem>>, vector<1x64x32xbf16>
    %134 = vector.shape_cast %133 : vector<1x64x32xbf16> to vector<64x32xbf16>
    %cst_57 = arith.constant dense<0.000000e+00> : vector<8x32xf32>
    %135 = tpu.matmul %132, %134, %cst_57 {dimension_numbers = #tpu.dot_dimension_numbers<[1], [0], [0], [1], [0, 0, 1, 1], [], []>} : vector<8x64xbf16>, vector<64x32xbf16>, vector<8x32xf32> -> vector<8x32xf32>
    %136 = vector.broadcast %13 : vector<1x32xf32> to vector<8x32xf32>
    %137 = arith.addf %135, %136 : vector<8x32xf32>
    %138 = arith.addf %91, %137 : vector<8x32xf32>
    %c0_58 = arith.constant 0 : index
    %c0_59 = arith.constant 0 : index
    %c0_60 = arith.constant 0 : index
    %139 = vector.load %arg13[%c0_58, %c0_59, %c0_60] : memref<1x8x32xf32, #tpu.memory_space<vmem>>, vector<1x8x32xf32>
    %140 = vector.shape_cast %139 : vector<1x8x32xf32> to vector<8x32xf32>
    %141 = vector.shape_cast %138 : vector<8x32xf32> to vector<1x8x32xf32>
    tpu.vector_store %arg13[%c0_58, %c0_59, %c0_60], %141 {strides = array<i32>} : memref<1x8x32xf32, #tpu.memory_space<vmem>>, vector<1x8x32xf32>,
    return
  }
  func.func @transform_0(%arg0: i32, %arg1: i32) -> (i32, i32, i32) {
    %c0_i32 = arith.constant 0 : i32
    %c0_i32_0 = arith.constant 0 : i32
    %c0_i32_1 = arith.constant 0 : i32
    return %arg0, %c0_i32, %c0_i32_0 : i32, i32, i32
  }
  func.func @transform_1(%arg0: i32, %arg1: i32) -> (i32, i32, i32, i32) {
    %c0_i32 = arith.constant 0 : i32
    %c0_i32_0 = arith.constant 0 : i32
    %c0_i32_1 = arith.constant 0 : i32
    %c0_i32_2 = arith.constant 0 : i32
    return %c0_i32, %arg0, %c0_i32_0, %c0_i32_1 : i32, i32, i32, i32
  }
  func.func @transform_2(%arg0: i32, %arg1: i32) -> (i32, i32, i32) {
    %c0_i32 = arith.constant 0 : i32
    %c0_i32_0 = arith.constant 0 : i32
    %c0_i32_1 = arith.constant 0 : i32
    return %arg0, %c0_i32, %c0_i32_0 : i32, i32, i32
  }
  func.func @transform_3(%arg0: i32, %arg1: i32) -> (i32, i32, i32, i32) {
    %c0_i32 = arith.constant 0 : i32
    %c0_i32_0 = arith.constant 0 : i32
    %c0_i32_1 = arith.constant 0 : i32
    %c0_i32_2 = arith.constant 0 : i32
    return %arg0, %c0_i32, %c0_i32_0, %c0_i32_1 : i32, i32, i32, i32
  }
  func.func @transform_4(%arg0: i32, %arg1: i32) -> (i32, i32, i32, i32, i32) {
    %c0_i32 = arith.constant 0 : i32
    %c0_i32_0 = arith.constant 0 : i32
    %c0_i32_1 = arith.constant 0 : i32
    %c0_i32_2 = arith.constant 0 : i32
    %c0_i32_3 = arith.constant 0 : i32
    return %arg1, %c0_i32, %c0_i32_0, %c0_i32_1, %c0_i32_2 : i32, i32, i32, i32, i32
  }
  func.func @transform_5(%arg0: i32, %arg1: i32) -> (i32, i32, i32, i32, i32) {
    %c0_i32 = arith.constant 0 : i32
    %c0_i32_0 = arith.constant 0 : i32
    %c0_i32_1 = arith.constant 0 : i32
    %c0_i32_2 = arith.constant 0 : i32
    %c0_i32_3 = arith.constant 0 : i32
    return %arg1, %c0_i32, %c0_i32_0, %c0_i32_1, %c0_i32_2 : i32, i32, i32, i32, i32
  }
  func.func @transform_6(%arg0: i32, %arg1: i32) -> (i32, i32, i32, i32) {
    %c0_i32 = arith.constant 0 : i32
    %c0_i32_0 = arith.constant 0 : i32
    %c0_i32_1 = arith.constant 0 : i32
    %c0_i32_2 = arith.constant 0 : i32
    return %arg1, %c0_i32, %c0_i32_0, %c0_i32_1 : i32, i32, i32, i32
  }
  func.func @transform_7(%arg0: i32, %arg1: i32) -> (i32, i32, i32) {
    %c0_i32 = arith.constant 0 : i32
    %c0_i32_0 = arith.constant 0 : i32
    %c0_i32_1 = arith.constant 0 : i32
    return %arg1, %c0_i32, %c0_i32_0 : i32, i32, i32
  }
  func.func @transform_8(%arg0: i32, %arg1: i32) -> (i32, i32, i32) {
    %c0_i32 = arith.constant 0 : i32
    %c0_i32_0 = arith.constant 0 : i32
    %c0_i32_1 = arith.constant 0 : i32
    return %arg1, %c0_i32, %c0_i32_0 : i32, i32, i32
  }
  func.func @transform_9(%arg0: i32, %arg1: i32) -> (i32, i32, i32) {
    %c0_i32 = arith.constant 0 : i32
    %c0_i32_0 = arith.constant 0 : i32
    %c0_i32_1 = arith.constant 0 : i32
    return %arg1, %c0_i32, %c0_i32_0 : i32, i32, i32
  }
  func.func @transform_10(%arg0: i32, %arg1: i32) -> (i32, i32, i32) {
    %c0_i32 = arith.constant 0 : i32
    %c0_i32_0 = arith.constant 0 : i32
    %c0_i32_1 = arith.constant 0 : i32
    return %arg1, %c0_i32, %c0_i32_0 : i32, i32, i32
  }
  func.func @transform_11(%arg0: i32, %arg1: i32) -> (i32, i32, i32) {
    %c0_i32 = arith.constant 0 : i32
    %c0_i32_0 = arith.constant 0 : i32
    %c0_i32_1 = arith.constant 0 : i32
    return %arg0, %c0_i32, %c0_i32_0 : i32, i32, i32
  }
}

</mosaic_0001>

<bundles_post_ra>
// kernel: _forward_core.2
= control target key start
LH: loop header
LB: loop body
LE: loop exit
PB: predicated region body
PF: predicated region fallthrough
CT: control target
= control target key end

     0   :  { %v899_v0 = vmov 0   ;;  %v55_v51 = vlaneseq  ;;  %vm901_vm0 = vmmov 0   ;;  %s1226_s4 = inlined_call_operand.vmem [shape: f32[128,1], index: 4, kind: input, shape index: {}]   ;;  %s1227_s3 = inlined_call_operand.vmem [shape: f32[128,1], index: 3, kind: input, shape index: {}]   ;;  %s1228_s6 = inlined_call_operand.vmem [shape: f32[128,1], index: 6, kind: input, shape index: {}]   ;;  %s1229_s5 = inlined_call_operand.vmem [shape: bf16[128,128], index: 5, kind: input, shape index: {}]   ;;  %s1230_s8 = inlined_call_operand.vmem [shape: f32[4,1], index: 8, kind: input, shape index: {}]   ;;  %s1231_s0 = inlined_call_operand.vmem [shape: f32[1,128], index: 0, kind: input, shape index: {}]   ;;  %s1232_s1 = inlined_call_operand.vmem [shape: f32[1,128], index: 1, kind: input, shape index: {}]   ;;  %s1233_s2 = inlined_call_operand.vmem [shape: f32[1,128], index: 2, kind: input, shape index: {}]   ;;  %s1234_s7 = inlined_call_operand.vmem [shape: bf16[4,128], index: 7, kind: input, shape index: {}]   ;;  %s1235_s9 = inlined_call_operand.vmem [shape: f32[4,128], index: 9, kind: output, shape index: {}]  }
   0x1   :  { %826 = vset.pattern.permute.xlu1 %v899_v0  ;;  %825 = vset.pattern.permute.xlu0 %v899_v0  ;;  %v52_v1 = vld [vmem:[%s1226_s4 + $0x70] sm:$0xff]  ;;  %v53_v3 = vld [vmem:[%s1226_s4 + $0x78] sm:$0xff]  ;;  %v50_v5 = vld [vmem:[%s1226_s4 + $0x60] sm:$0xff] }
   0x2   :  { %v170_v2 = vld [vmem:[%s1227_s3 + $0x70] sm:$0xff]  ;;  %132 = vperm.xlu0 %825, %v52_v1   ;;  %v171_v4 = vld [vmem:[%s1227_s3 + $0x78] sm:$0xff]  ;;  %v51_v6 = vld [vmem:[%s1226_s4 + $0x68] sm:$0xff]  ;;  %v56_v54 = vshrl.u32 %v55_v51, 7 }
   0x3   :  { %244 = vperm.xlu1 %826, %v170_v2   ;;  %v169_v7 = vld [vmem:[%s1227_s3 + $0x68] sm:$0xff]  ;;  %v168_v8 = vld [vmem:[%s1227_s3 + $0x60] sm:$0xff]  ;;  %v49_v9 = vld [vmem:[%s1226_s4 + $0x58] sm:$0xff] }
   0x4   :  { %v48_v10 = vld [vmem:[%s1226_s4 + $0x50] sm:$0xff]  ;;  %v167_v11 = vld [vmem:[%s1227_s3 + $0x58] sm:$0xff]  ;;  %v47_v13 = vld [vmem:[%s1226_s4 + $0x48] sm:$0xff]  ;;  %v57_v57 = vsub.s32 0, %v56_v54 }
   0x5   :  { %v166_v12 = vld [vmem:[%s1227_s3 + $0x50] sm:$0xff]  ;;  %v46_v14 = vld [vmem:[%s1226_s4 + $0x40] sm:$0xff]  ;;  %v165_v15 = vld [vmem:[%s1227_s3 + $0x48] sm:$0xff] }
   0x6   :  { %137 = vperm.xlu0 %825, %v53_v3   ;;  %v164_v16 = vld [vmem:[%s1227_s3 + $0x40] sm:$0xff]  ;;  %v45_v17 = vld [vmem:[%s1226_s4 + $0x38] sm:$0xff]  ;;  %v44_v18 = vld [vmem:[%s1226_s4 + $0x30] sm:$0xff] }
   0x7   :  { %249 = vperm.xlu1 %826, %v171_v4   ;;  %v163_v19 = vld [vmem:[%s1227_s3 + $0x38] sm:$0xff]  ;;  %v162_v20 = vld [vmem:[%s1227_s3 + $0x30] sm:$0xff]  ;;  %v43_v21 = vld [vmem:[%s1226_s4 + $0x28] sm:$0xff] }
   0x8   :  { %v42_v22 = vld [vmem:[%s1226_s4 + $0x20] sm:$0xff]  ;;  %v161_v23 = vld [vmem:[%s1227_s3 + $0x28] sm:$0xff]  ;;  %v41_v25 = vld [vmem:[%s1226_s4 + $0x18] sm:$0xff] }
   0x9   :  { %v160_v24 = vld [vmem:[%s1227_s3 + $0x20] sm:$0xff]  ;;  %v40_v26 = vld [vmem:[%s1226_s4 + $0x10] sm:$0xff]  ;;  %v159_v27 = vld [vmem:[%s1227_s3 + $0x18] sm:$0xff] }
   0xa   :  { %122 = vperm.xlu0 %825, %v50_v5   ;;  %v158_v28 = vld [vmem:[%s1227_s3 + $0x10] sm:$0xff]  ;;  %v39_v29 = vld [vmem:[%s1226_s4 + $0x8] sm:$0xff]  ;;  %v38_v30 = vld [vmem:[%s1226_s4] sm:$0xff] }
   0xb   :  { %127 = vperm.xlu1 %826, %v51_v6   ;;  %v157_v31 = vld [vmem:[%s1227_s3 + $0x8] sm:$0xff]  ;;  %v156_v32 = vld [vmem:[%s1227_s3] sm:$0xff]  ;;  %v371_v33 = vld [vmem:[%s1228_s6 + $0x78] sm:$0xff] }
   0xc   :  { %v370_v34 = vld [vmem:[%s1228_s6 + $0x70] sm:$0xff]  ;;  %v369_v35 = vld [vmem:[%s1228_s6 + $0x68] sm:$0xff]  ;;  %v368_v36 = vld [vmem:[%s1228_s6 + $0x60] sm:$0xff] }
   0xd   :  { %v367_v37 = vld [vmem:[%s1228_s6 + $0x58] sm:$0xff]  ;;  %v366_v38 = vld [vmem:[%s1228_s6 + $0x50] sm:$0xff]  ;;  %v365_v39 = vld [vmem:[%s1228_s6 + $0x48] sm:$0xff] }
   0xe   :  { %234 = vperm.xlu0 %825, %v168_v8   ;;  %v364_v40 = vld [vmem:[%s1228_s6 + $0x40] sm:$0xff]  ;;  %v363_v41 = vld [vmem:[%s1228_s6 + $0x38] sm:$0xff]  ;;  %v362_v42 = vld [vmem:[%s1228_s6 + $0x30] sm:$0xff] }
   0xf   :  { %239 = vperm.xlu1 %826, %v169_v7   ;;  %v361_v43 = vld [vmem:[%s1228_s6 + $0x28] sm:$0xff]  ;;  %v360_v44 = vld [vmem:[%s1228_s6 + $0x20] sm:$0xff]  ;;  %v359_v46 = vld [vmem:[%s1228_s6 + $0x18] sm:$0xff] }
  0x10   :  { %v827_v45 = vld [vmem:[%s1229_s5] sm:$0xff]   ;;  %v358_v47 = vld [vmem:[%s1228_s6 + $0x10] sm:$0xff]  ;;  %v357_v48 = vld [vmem:[%s1228_s6 + $0x8] sm:$0xff] }
  0x11   :  { %786 = vmatprep.mubr.bf16.mxu0 %v827_v45  ;;  %v356_v49 = vld [vmem:[%s1228_s6] sm:$0xff] }
  0x12   :  { %112 = vperm.xlu0 %825, %v48_v10   ;;  %v686_v50 = vld [vmem:[%s1230_s8] sm:$0xf] }
  0x13   :  { %117 = vperm.xlu1 %826, %v49_v9   ;;  %v33_v52 = vld [vmem:[%s1232_s1] sm:$0x1] }
  0x14   :  { %v34_v53 = vld [vmem:[%s1231_s0] sm:$0x1] }
  0x15   :  { %v35_v55 = vmul.f32 %v34_v53, %v33_v52  ;;  %v36_v56 = vld [vmem:[%s1233_s2] sm:$0x1] }
  0x16   :  { %224 = vperm.xlu0 %825, %v166_v12  }
  0x17   :  { %229 = vperm.xlu1 %826, %v167_v11   ;;  %v37_v58 = vadd.f32 %v36_v56, %v35_v55 }
  0x19   :  { %v1111_v59 = vrot.slane %v37_v58, %v57_v57 }
  0x1a   :  { %102 = vperm.xlu0 %825, %v46_v14  }
  0x1b   :  { %107 = vperm.xlu1 %826, %v47_v13  }
  0x1e   :  { %214 = vperm.xlu0 %825, %v164_v16  }
  0x1f   :  { %219 = vperm.xlu1 %826, %v165_v15  }
  0x22   :  { %92 = vperm.xlu0 %825, %v44_v18  }
  0x23   :  { %97 = vperm.xlu1 %826, %v45_v17  }
  0x26   :  { %204 = vperm.xlu0 %825, %v162_v20  }
  0x27   :  { %209 = vperm.xlu1 %826, %v163_v19  }
  0x2a   :  { %82 = vperm.xlu0 %825, %v42_v22  }
  0x2b   :  { %87 = vperm.xlu1 %826, %v43_v21  }
  0x2e   :  { %194 = vperm.xlu0 %825, %v160_v24  }
  0x2f   :  { %199 = vperm.xlu1 %826, %v161_v23  }
  0x32   :  { %72 = vperm.xlu0 %825, %v40_v26  }
  0x33   :  { %77 = vperm.xlu1 %826, %v41_v25  }
  0x36   :  { %184 = vperm.xlu0 %825, %v158_v28  }
  0x37   :  { %189 = vperm.xlu1 %826, %v159_v27  }
  0x3a   :  { %62 = vperm.xlu0 %825, %v38_v30  }
  0x3b   :  { %67 = vperm.xlu1 %826, %v39_v29  }
  0x3e   :  { %174 = vperm.xlu0 %825, %v156_v32  }
  0x3f   :  { %179 = vperm.xlu1 %826, %v157_v31  }
  0x42   :  { %444 = vperm.xlu0 %825, %v370_v34  }
  0x43   :  { %449 = vperm.xlu1 %826, %v371_v33  }
  0x46   :  { %434 = vperm.xlu0 %825, %v368_v36  }
  0x47   :  { %439 = vperm.xlu1 %826, %v369_v35  }
  0x4a   :  { %424 = vperm.xlu0 %825, %v366_v38  }
  0x4b   :  { %429 = vperm.xlu1 %826, %v367_v37  }
  0x4e   :  { %414 = vperm.xlu0 %825, %v364_v40  }
  0x4f   :  { %419 = vperm.xlu1 %826, %v365_v39  }
  0x52   :  { %404 = vperm.xlu0 %825, %v362_v42  }
  0x53   :  { %409 = vperm.xlu1 %826, %v363_v41  }
  0x56   :  { %394 = vperm.xlu0 %825, %v360_v44  }
  0x57   :  { %399 = vperm.xlu1 %826, %v361_v43  }
  0x5a   :  { %384 = vperm.xlu0 %825, %v358_v47  }
  0x5b   :  { %389 = vperm.xlu1 %826, %v359_v46  }
  0x5e   :  { %374 = vperm.xlu0 %825, %v356_v49  }
  0x5f   :  { %379 = vperm.xlu1 %826, %v357_v48  }
  0x62   :  { %689 = vperm.xlu0 %825, %v686_v50  }
  0x7d   :  { %v133_v60 = vpop.permute.xlu0 %132 }
  0x7e   :  { %v245_v61 = vpop.permute.xlu1 %244  ;;  %v154_v62 = vmul.f32 %v133_v60, %v1111_v59 }
  0x80   :  { %v266_v63 = vsub.f32 %v154_v62, %v245_v61 }
  0x81   :  { %v138_v0 = vpop.permute.xlu0 %137 }
  0x82   :  { %v250_v1 = vpop.permute.xlu1 %249  ;;  %v282_v2 = vmul.f32 %v266_v63, %v266_v63  ;;  %v155_v3 = vmul.f32 %v138_v0, %v1111_v59 }
  0x84   :  { %v298_v4 = vmul.f32 -0.5, %v282_v2  ;;  %v267_v5 = vsub.f32 %v155_v3, %v250_v1 }
  0x85   :  { %v123_v6 = vpop.permute.xlu0 %122 }
  0x86   :  { %v128_v7 = vpop.permute.xlu1 %127  ;;  %v283_v8 = vmul.f32 %v267_v5, %v267_v5  ;;  %v328_v9 = vmul.f32 1.442695, %v298_v4  ;;  %v152_v11 = vmul.f32 %v123_v6, %v1111_v59 }
  0x87   :  { %v153_v12 = vmul.f32 %v128_v7, %v1111_v59 }
  0x88   :  { %v299_v10 = vmul.f32 -0.5, %v283_v8  ;;  %835 = vpow2.f32 %v328_v9 }
  0x89   :  { %v235_v14 = vpop.permute.xlu0 %234 }
  0x8a   :  { %v240_v13 = vpop.permute.xlu1 %239  ;;  %v330_v15 = vmul.f32 1.442695, %v299_v10  ;;  %v264_v17 = vsub.f32 %v152_v11, %v235_v14 }
  0x8b   :  { %v265_v16 = vsub.f32 %v153_v12, %v240_v13 }
  0x8c   :  { %837 = vpow2.f32 %v330_v15  ;;  %v280_v19 = vmul.f32 %v264_v17, %v264_v17 }
  0x8d   :  { %v281_v18 = vmul.f32 %v265_v16, %v265_v16  ;;  %v113_v21 = vpop.permute.xlu0 %112 }
  0x8e   :  { %v118_v20 = vpop.permute.xlu1 %117  ;;  %v296_v23 = vmul.f32 -0.5, %v280_v19  ;;  %v150_v27 = vmul.f32 %v113_v21, %v1111_v59 }
  0x8f   :  { %v297_v22 = vmul.f32 -0.5, %v281_v18  ;;  %v151_v26 = vmul.f32 %v118_v20, %v1111_v59 }
  0x90   :  { %v324_v25 = vmul.f32 1.442695, %v296_v23 }
  0x91   :  { %v326_v24 = vmul.f32 1.442695, %v297_v22  ;;  %v225_v29 = vpop.permute.xlu0 %224 }
  0x92   :  { %v230_v28 = vpop.permute.xlu1 %229  ;;  %v262_v31 = vsub.f32 %v150_v27, %v225_v29 }
  0x93   :  { %839 = vpow2.f32 %v326_v24  ;;  %v263_v30 = vsub.f32 %v151_v26, %v230_v28 }
  0x94   :  { %841 = vpow2.f32 %v324_v25  ;;  %v278_v33 = vmul.f32 %v262_v31, %v262_v31 }
  0x95   :  { %v279_v32 = vmul.f32 %v263_v30, %v263_v30  ;;  %v103_v35 = vpop.permute.xlu0 %102  ;;  %v836_v38 = vpop.eup %835 }
  0x96   :  { %v108_v34 = vpop.permute.xlu1 %107  ;;  %v294_v37 = vmul.f32 -0.5, %v278_v33  ;;  %v148_v42 = vmul.f32 %v103_v35, %v1111_v59 }
  0x97   :  { %v295_v36 = vmul.f32 -0.5, %v279_v32  ;;  %v149_v41 = vmul.f32 %v108_v34, %v1111_v59 }
  0x98   :  { %v320_v40 = vmul.f32 1.442695, %v294_v37 }
  0x99   :  { %v322_v39 = vmul.f32 1.442695, %v295_v36  ;;  %v838_v43 = vpop.eup %837  ;;  %v215_v45 = vpop.permute.xlu0 %214 }
  0x9a   :  { %v220_v44 = vpop.permute.xlu1 %219  ;;  %v260_v47 = vsub.f32 %v148_v42, %v215_v45  ;;  %v355_v48 = vpack.c.bf16 %v838_v43, %v836_v38 }
  0x9b   :  { %843 = vpow2.f32 %v322_v39  ;;  %v261_v46 = vsub.f32 %v149_v41, %v220_v44 }
  0x9c   :  { %845 = vpow2.f32 %v320_v40  ;;  %v276_v50 = vmul.f32 %v260_v47, %v260_v47  ;;  %770 = vmatprep.subr.bf16.mxu0 %v355_v48 }
  0x9d   :  { %v277_v49 = vmul.f32 %v261_v46, %v261_v46  ;;  %v93_v52 = vpop.permute.xlu0 %92  ;;  %771 = vmatpush3.bf16.msra.mxu0 %v355_v48 }
  0x9e   :  { %v98_v51 = vpop.permute.xlu1 %97  ;;  %v292_v54 = vmul.f32 -0.5, %v276_v50  ;;  %v146_v61 = vmul.f32 %v93_v52, %v1111_v59 }
  0x9f   :  { %v293_v53 = vmul.f32 -0.5, %v277_v49  ;;  %v147_v60 = vmul.f32 %v98_v51, %v1111_v59 }
  0xa0   :  { %v840_v55 = vpop.eup %839  ;;  %v316_v58 = vmul.f32 1.442695, %v292_v54 }
  0xa1   :  { %v842_v56 = vpop.eup %841  ;;  %v318_v57 = vmul.f32 1.442695, %v293_v53  ;;  %v205_v63 = vpop.permute.xlu0 %204 }
  0xa2   :  { %v210_v62 = vpop.permute.xlu1 %209  ;;  %v354_v0 = vpack.c.bf16 %v840_v55, %v842_v56  ;;  %v258_v2 = vsub.f32 %v146_v61, %v205_v63 }
  0xa3   :  { %847 = vpow2.f32 %v318_v57  ;;  %v259_v1 = vsub.f32 %v147_v60, %v210_v62 }
  0xa4   :  { %849 = vpow2.f32 %v316_v58  ;;  %772 = vmatprep.subr.bf16.mxu0 %v354_v0  ;;  %v274_v4 = vmul.f32 %v258_v2, %v258_v2 }
  0xa5   :  { %v275_v3 = vmul.f32 %v259_v1, %v259_v1  ;;  %773 = vmatpush3.bf16.msra.mxu0 %v354_v0  ;;  %v83_v6 = vpop.permute.xlu0 %82 }
  0xa6   :  { %v88_v5 = vpop.permute.xlu1 %87  ;;  %v290_v8 = vmul.f32 -0.5, %v274_v4  ;;  %v144_v14 = vmul.f32 %v83_v6, %v1111_v59  ;;  %v829_v6 = vld [vmem:[%s1229_s5 + $0x10] sm:$0xff]  }
  0xa7   :  { %v291_v7 = vmul.f32 -0.5, %v275_v3  ;;  %v145_v13 = vmul.f32 %v88_v5, %v1111_v59  ;;  %v828_v5 = vld [vmem:[%s1229_s5 + $0x8] sm:$0xff]  }
  0xa8   :  { %v844_v9 = vpop.eup %843  ;;  %v312_v12 = vmul.f32 1.442695, %v290_v8  ;;  %v831_v8 = vld [vmem:[%s1229_s5 + $0x20] sm:$0xff]  }
  0xa9   :  { %v846_v10 = vpop.eup %845  ;;  %v314_v11 = vmul.f32 1.442695, %v291_v7  ;;  %v195_v16 = vpop.permute.xlu0 %194  ;;  %v830_v7 = vld [vmem:[%s1229_s5 + $0x18] sm:$0xff]  }
  0xaa   :  { %v200_v15 = vpop.permute.xlu1 %199  ;;  %v353_v17 = vpack.c.bf16 %v844_v9, %v846_v10  ;;  %v256_v19 = vsub.f32 %v144_v14, %v195_v16  ;;  %v832_v9 = vld [vmem:[%s1229_s5 + $0x28] sm:$0xff]   ;;  %v833_v10 = vld [vmem:[%s1229_s5 + $0x30] sm:$0xff]  }
  0xab   :  { %851 = vpow2.f32 %v314_v11  ;;  %v257_v18 = vsub.f32 %v145_v13, %v200_v15  ;;  %v834_v11 = vld [vmem:[%s1229_s5 + $0x38] sm:$0xff]  }
  0xac   :  { %853 = vpow2.f32 %v312_v12  ;;  %774 = vmatprep.subr.bf16.mxu0 %v353_v17  ;;  %v272_v21 = vmul.f32 %v256_v19, %v256_v19  ;;  %v900_v12 = vmov 0.0  }
  0xad   :  { %v273_v20 = vmul.f32 %v257_v18, %v257_v18  ;;  %775 = vmatpush3.bf16.msra.mxu0 %v353_v17  ;;  %v73_v23 = vpop.permute.xlu0 %72  ;;  %802 = vmatprep.subr.bf16.mxu1 %v900_v12 }
  0xae   :  { %v78_v22 = vpop.permute.xlu1 %77  ;;  %v288_v25 = vmul.f32 -0.5, %v272_v21  ;;  %v142_v31 = vmul.f32 %v73_v23, %v1111_v59  ;;  %818 = vmatprep.mubr.msk.bf16.mxu1 %vm901_vm0, %v900_v12 }
  0xaf   :  { %v289_v24 = vmul.f32 -0.5, %v273_v20  ;;  %v143_v30 = vmul.f32 %v78_v22, %v1111_v59 }
  0xb0   :  { %v848_v26 = vpop.eup %847  ;;  %v308_v29 = vmul.f32 1.442695, %v288_v25 }
  0xb1   :  { %v850_v27 = vpop.eup %849  ;;  %v310_v28 = vmul.f32 1.442695, %v289_v24  ;;  %v185_v33 = vpop.permute.xlu0 %184 }
  0xb2   :  { %v190_v32 = vpop.permute.xlu1 %189  ;;  %v352_v34 = vpack.c.bf16 %v848_v26, %v850_v27  ;;  %v254_v36 = vsub.f32 %v142_v31, %v185_v33 }
  0xb3   :  { %855 = vpow2.f32 %v310_v28  ;;  %v255_v35 = vsub.f32 %v143_v30, %v190_v32 }
  0xb4   :  { %857 = vpow2.f32 %v308_v29  ;;  %776 = vmatprep.subr.bf16.mxu0 %v352_v34  ;;  %v270_v38 = vmul.f32 %v254_v36, %v254_v36 }
  0xb5   :  { %v271_v37 = vmul.f32 %v255_v35, %v255_v35  ;;  %777 = vmatpush3.bf16.msra.mxu0 %v352_v34  ;;  %v63_v40 = vpop.permute.xlu0 %62 }
  0xb6   :  { %v68_v39 = vpop.permute.xlu1 %67  ;;  %v286_v42 = vmul.f32 -0.5, %v270_v38  ;;  %v140_v48 = vmul.f32 %v63_v40, %v1111_v59 }
  0xb7   :  { %v287_v41 = vmul.f32 -0.5, %v271_v37  ;;  %v141_v47 = vmul.f32 %v68_v39, %v1111_v59 }
  0xb8   :  { %v852_v43 = vpop.eup %851  ;;  %v304_v46 = vmul.f32 1.442695, %v286_v42 }
  0xb9   :  { %v854_v44 = vpop.eup %853  ;;  %v306_v45 = vmul.f32 1.442695, %v287_v41  ;;  %v175_v50 = vpop.permute.xlu0 %174 }
  0xba   :  { %v180_v49 = vpop.permute.xlu1 %179  ;;  %v351_v51 = vpack.c.bf16 %v852_v43, %v854_v44  ;;  %v252_v53 = vsub.f32 %v140_v48, %v175_v50 }
  0xbb   :  { %859 = vpow2.f32 %v306_v45  ;;  %v253_v52 = vsub.f32 %v141_v47, %v180_v49 }
  0xbc   :  { %861 = vpow2.f32 %v304_v46  ;;  %778 = vmatprep.subr.bf16.mxu0 %v351_v51  ;;  %v268_v55 = vmul.f32 %v252_v53, %v252_v53 }
  0xbd   :  { %v269_v54 = vmul.f32 %v253_v52, %v253_v52  ;;  %779 = vmatpush3.bf16.msra.mxu0 %v351_v51  ;;  %v445_v17 = vpop.permute.xlu0 %444 }
  0xbe   :  { %v284_v57 = vmul.f32 -0.5, %v268_v55  ;;  %v450_v15 = vpop.permute.xlu1 %449 }
  0xbf   :  { %v285_v56 = vmul.f32 -0.5, %v269_v54 }
  0xc0   :  { %v856_v58 = vpop.eup %855  ;;  %v300_v62 = vmul.f32 1.442695, %v284_v57 }
  0xc1   :  { %v858_v60 = vpop.eup %857  ;;  %v302_v61 = vmul.f32 1.442695, %v285_v56  ;;  %v435_v22 = vpop.permute.xlu0 %434 }
  0xc2   :  { %v350_v63 = vpack.c.bf16 %v856_v58, %v858_v60  ;;  %v440_v20 = vpop.permute.xlu1 %439 }
  0xc3   :  { %863 = vpow2.f32 %v302_v61 }
  0xc4   :  { %865 = vpow2.f32 %v300_v62  ;;  %780 = vmatprep.subr.bf16.mxu0 %v350_v63 }
  0xc5   :  { %781 = vmatpush3.bf16.msra.mxu0 %v350_v63  ;;  %v425_v27 = vpop.permute.xlu0 %424 }
  0xc6   :  { %v430_v25 = vpop.permute.xlu1 %429 }
  0xc8   :  { %v860_v59 = vpop.eup %859 }
  0xc9   :  { %v862_v0 = vpop.eup %861  ;;  %v415_v32 = vpop.permute.xlu0 %414 }
  0xca   :  { %v349_v1 = vpack.c.bf16 %v860_v59, %v862_v0  ;;  %v420_v30 = vpop.permute.xlu1 %419 }
  0xcc   :  { %782 = vmatprep.subr.bf16.mxu0 %v349_v1 }
  0xcd   :  { %783 = vmatpush3.bf16.msra.mxu0 %v349_v1  ;;  %v405_v41 = vpop.permute.xlu0 %404 }
  0xce   :  { %v410_v36 = vpop.permute.xlu1 %409 }
  0xd0   :  { %v864_v2 = vpop.eup %863 }
  0xd1   :  { %v866_v3 = vpop.eup %865  ;;  %v395_v54 = vpop.permute.xlu0 %394 }
  0xd2   :  { %v348_v4 = vpack.c.bf16 %v864_v2, %v866_v3  ;;  %v400_v50 = vpop.permute.xlu1 %399 }
  0xd4   :  { %784 = vmatprep.subr.bf16.mxu0 %v348_v4 }
  0xd5   :  { %785 = vmatpush3.bf16.msra.mxu0 %v348_v4  ;;  %v385_v63 = vpop.permute.xlu0 %384 }
  0xd6   :  { %v390_v60 = vpop.permute.xlu1 %389 }
  0xd8   :  { %787 = vmatmul.mubr.bf16.vlgmr.msra.gmra.mxu0 %v828_v5 }
  0xd9   :  { %790 = vmatprep.mubr.bf16.mxu0 %v829_v6 }
  0xda   :  { %v380_v6 = vpop.permute.xlu1 %379 }
  0xe0   :  { %791 = vmatmul.mubr.bf16.gmra.mxu0 %v830_v7 }
  0xe1   :  { %794 = vmatprep.mubr.bf16.mxu0 %v831_v8 }
  0xe8   :  { %795 = vmatmul.mubr.bf16.gmra.mxu0 %v832_v9 }
  0xe9   :  { %798 = vmatprep.mubr.bf16.mxu0 %v833_v10 }
  0xf0   :  { %799 = vmatmul.mubr.bf16.gmra.mxu0 %v834_v11 }
 0x198   :  { %v1152_v13 = vpop.f32.mrf.mxu0 }
 0x199   :  { %v1187_v4 = vadd.f32 %v1152_v13, %v385_v63 }
 0x19a   :  { %v1154_v14 = vpop.f32.mrf.mxu0 }
 0x19b   :  { %v615_v13 = vmul.f32 0.70710677, %v1187_v4 }
 0x19c   :  { %v789_v16 = vpop.f32.mrf.mxu0 }
 0x19d   :  { %v1183_v2 = vadd.f32 %v789_v16, %v390_v60 }
 0x19e   :  { %v1156_v18 = vpop.f32.mrf.mxu0 }
 0x19f   :  { %v616_v10 = vmul.f32 0.70710677, %v1183_v2  ;;  %v1192_v11 = vadd.f32 %v1156_v18, %v380_v6 }
 0x1a0   :  { %v792_v19 = vpop.f32.mrf.mxu0 }
 0x1a1   :  { %v1174_v57 = vadd.f32 %v792_v19, %v405_v41  ;;  %v614_v18 = vmul.f32 0.70710677, %v1192_v11 }
 0x1a2   :  { %v550_v21 = vpop.f32.mrf.mxu0 }
 0x1a3   :  { %v619_v59 = vmul.f32 0.70710677, %v1174_v57  ;;  %v1181_v0 = vadd.f32 %v550_v21, %v395_v54 }
 0x1a4   :  { %v793_v23 = vpop.f32.mrf.mxu0 }
 0x1a5   :  { %v1171_v55 = vadd.f32 %v793_v23, %v410_v36  ;;  %v617_v7 = vmul.f32 0.70710677, %v1181_v0 }
 0x1a6   :  { %v553_v24 = vpop.f32.mrf.mxu0 }
 0x1a7   :  { %v620_v61 = vmul.f32 0.70710677, %v1171_v55  ;;  %v1178_v62 = vadd.f32 %v553_v24, %v400_v50 }
 0x1a8   :  { %v796_v26 = vpop.f32.mrf.mxu0 }
 0x1a9   :  { %v1162_v42 = vadd.f32 %v796_v26, %v425_v27  ;;  %v618_v3 = vmul.f32 0.70710677, %v1178_v62  ;;  %v602_v6 = vmul.f32 0.5, %v1178_v62 }
 0x1aa   :  { %v566_v28 = vpop.f32.mrf.mxu0 }
 0x1ab   :  { %v623_v51 = vmul.f32 0.70710677, %v1162_v42  ;;  %v1169_v52 = vadd.f32 %v566_v28, %v415_v32 }
 0x1ac   :  { %v797_v29 = vpop.f32.mrf.mxu0 }
 0x1ad   :  { %v1158_v37 = vadd.f32 %v797_v29, %v430_v25  ;;  %v621_v58 = vmul.f32 0.70710677, %v1169_v52  ;;  %v605_v50 = vmul.f32 0.5, %v1169_v52 }
 0x1ae   :  { %v569_v31 = vpop.f32.mrf.mxu0 }
 0x1af   :  { %v624_v46 = vmul.f32 0.70710677, %v1158_v37  ;;  %v1166_v47 = vadd.f32 %v569_v31, %v420_v30 }
 0x1b0   :  { %v800_v33 = vpop.f32.mrf.mxu0 }
 0x1b1   :  { %v591_v34 = vadd.f32 %v800_v33, %v445_v17  ;;  %v622_v56 = vmul.f32 0.70710677, %v1166_v47 }
 0x1b2   :  { %v582_v35 = vpop.f32.mrf.mxu0 }
 0x1b3   :  { %v627_v38 = vmul.f32 0.70710677, %v591_v34  ;;  %v1160_v39 = vadd.f32 %v582_v35, %v435_v22  ;;  %v611_v16 = vmul.f32 0.5, %v591_v34  ;;  %v608_v35 = vmul.f32 0.5, %v1158_v37 }
 0x1b4   :  { %v801_v40 = vpop.f32.mrf.mxu0 }
 0x1b5   :  { %867 = verf.f32 %v627_v38  ;;  %v594_v43 = vadd.f32 %v801_v40, %v450_v15  ;;  %v625_v44 = vmul.f32 0.70710677, %v1160_v39  ;;  %v375_v15 = vpop.permute.xlu0 %374  ;;  %v609_v30 = vmul.f32 0.5, %v1160_v39 }
 0x1b6   :  { %v585_v45 = vpop.f32.mrf.mxu0  ;;  %v1196_v21 = vadd.f32 %v1154_v14, %v375_v15  ;;  %v607_v40 = vmul.f32 0.5, %v1162_v42 }
 0x1b7   :  { %v628_v48 = vmul.f32 0.70710677, %v594_v43  ;;  %869 = verf.f32 %v625_v44  ;;  %v586_v49 = vadd.f32 %v585_v45, %v440_v20  ;;  %v612_v17 = vmul.f32 0.5, %v594_v43 }
 0x1b8   :  { %v613_v14 = vmul.f32 0.70710677, %v1196_v21 }
 0x1b9   :  { %871 = verf.f32 %v628_v48  ;;  %v626_v53 = vmul.f32 0.70710677, %v586_v49  ;;  %v610_v27 = vmul.f32 0.5, %v586_v49  ;;  %v606_v48 = vmul.f32 0.5, %v1166_v47 }
 0x1ba   :  { %873 = verf.f32 %v624_v46  ;;  %v603_v47 = vmul.f32 0.5, %v1174_v57  ;;  %v600_v57 = vmul.f32 0.5, %v1183_v2 }
 0x1bb   :  { %875 = verf.f32 %v626_v53 }
 0x1bc   :  { %877 = verf.f32 %v623_v51 }
 0x1bd   :  { %879 = verf.f32 %v622_v56  ;;  %v604_v56 = vmul.f32 0.5, %v1171_v55 }
 0x1be   :  { %881 = verf.f32 %v621_v58 }
 0x1bf   :  { %883 = verf.f32 %v620_v61 }
 0x1c0   :  { %885 = verf.f32 %v619_v59 }
 0x1c1   :  { %887 = verf.f32 %v618_v3 }
 0x1c2   :  { %v868_v1 = vpop.eup %867  ;;  %889 = verf.f32 %v617_v7 }
 0x1c3   :  { %v659_v8 = vadd.f32 1.0, %v868_v1  ;;  %891 = verf.f32 %v616_v10 }
 0x1c4   :  { %v870_v5 = vpop.eup %869  ;;  %893 = verf.f32 %v615_v13 }
 0x1c5   :  { %v657_v23 = vadd.f32 1.0, %v870_v5  ;;  %v675_v24 = vmul.f32 %v659_v8, %v611_v16  ;;  %895 = verf.f32 %v614_v18  ;;  %v601_v8 = vmul.f32 0.5, %v1181_v0 }
 0x1c6   :  { %v872_v9 = vpop.eup %871  ;;  %897 = verf.f32 %v613_v14  ;;  %v597_v0 = vmul.f32 0.5, %v1196_v21 }
 0x1c7   :  { %v660_v19 = vadd.f32 1.0, %v872_v9  ;;  %v874_v20 = vpop.eup %873  ;;  %v673_v36 = vmul.f32 %v657_v23, %v609_v30 }
 0x1c8   :  { %v876_v22 = vpop.eup %875  ;;  %v656_v29 = vadd.f32 1.0, %v874_v20 }
 0x1c9   :  { %v676_v25 = vmul.f32 %v660_v19, %v612_v17  ;;  %v878_v26 = vpop.eup %877  ;;  %v658_v28 = vadd.f32 1.0, %v876_v22  ;;  %v599_v19 = vmul.f32 0.5, %v1187_v4  ;;  %v677_v4 = vld [vmem:[%s1234_s7] sm:$0x3] }
 0x1ca   :  { %v880_v32 = vpop.eup %879  ;;  %v655_v34 = vadd.f32 1.0, %v878_v26  ;;  %v672_v41 = vmul.f32 %v656_v29, %v608_v35 }
 0x1cb   :  { %v685_v31 = vpack.c.bf16 %v676_v25, %v675_v24  ;;  %v674_v33 = vmul.f32 %v658_v28, %v610_v27  ;;  %v882_v38 = vpop.eup %881  ;;  %v654_v43 = vadd.f32 1.0, %v880_v32  ;;  %v598_v24 = vmul.f32 0.5, %v1192_v11  ;;  %v690_v27 = vpop.permute.xlu0 %689 }
 0x1cc   :  { %v884_v44 = vpop.eup %883  ;;  %v671_v45 = vmul.f32 %v655_v34, %v607_v40  ;;  %v653_v46 = vadd.f32 1.0, %v882_v38 }
 0x1cd   :  { %803 = vmatpush3.bf16.msra.mxu1 %v685_v31  ;;  %v684_v39 = vpack.c.bf16 %v674_v33, %v673_v36  ;;  %v886_v49 = vpop.eup %885  ;;  %v652_v37 = vadd.f32 1.0, %v884_v44  ;;  %v670_v51 = vmul.f32 %v654_v43, %v606_v48 }
 0x1ce   :  { %804 = vmatprep.subr.bf16.mxu1 %v900_v12  ;;  %v683_v53 = vpack.c.bf16 %v672_v41, %v671_v45  ;;  %v888_v54 = vpop.eup %887  ;;  %v651_v42 = vadd.f32 1.0, %v886_v49  ;;  %v669_v58 = vmul.f32 %v653_v46, %v605_v50 }
 0x1cf   :  { %v890_v60 = vpop.eup %889  ;;  %v668_v61 = vmul.f32 %v652_v37, %v604_v56  ;;  %v650_v63 = vadd.f32 1.0, %v888_v54 }
 0x1d0   :  { %v682_v59 = vpack.c.bf16 %v670_v51, %v669_v58  ;;  %v892_v1 = vpop.eup %891  ;;  %v667_v5 = vmul.f32 %v651_v42, %v603_v47  ;;  %v649_v52 = vadd.f32 1.0, %v890_v60 }
 0x1d1   :  { %805 = vmatpush3.bf16.msra.mxu1 %v684_v39  ;;  %v894_v3 = vpop.eup %893  ;;  %v648_v7 = vadd.f32 1.0, %v892_v1  ;;  %v666_v9 = vmul.f32 %v650_v63, %v602_v6 }
 0x1d2   :  { %806 = vmatprep.subr.bf16.mxu1 %v900_v12  ;;  %v896_v55 = vpop.eup %895  ;;  %v681_v10 = vpack.c.bf16 %v668_v61, %v667_v5  ;;  %v647_v15 = vadd.f32 1.0, %v894_v3  ;;  %v665_v16 = vmul.f32 %v649_v52, %v601_v8 }
 0x1d3   :  { %v898_v17 = vpop.eup %897  ;;  %v664_v62 = vmul.f32 %v648_v7, %v600_v57  ;;  %v646_v20 = vadd.f32 1.0, %v896_v55 }
 0x1d4   :  { %v680_v13 = vpack.c.bf16 %v666_v9, %v665_v16  ;;  %v663_v22 = vmul.f32 %v647_v15, %v599_v19  ;;  %v645_v23 = vadd.f32 1.0, %v898_v17 }
 0x1d5   :  { %807 = vmatpush3.bf16.msra.mxu1 %v683_v53  ;;  %v662_v2 = vmul.f32 %v646_v20, %v598_v24 }
 0x1d6   :  { %808 = vmatprep.subr.bf16.mxu1 %v900_v12  ;;  %v679_v25 = vpack.c.bf16 %v664_v62, %v663_v22  ;;  %v661_v26 = vmul.f32 %v645_v23, %v597_v0 }
 0x1d8   :  { %v678_v18 = vpack.c.bf16 %v662_v2, %v661_v26 }
 0x1d9   :  { %809 = vmatpush3.bf16.msra.mxu1 %v682_v59 }
 0x1da   :  { %810 = vmatprep.subr.bf16.mxu1 %v900_v12 }
 0x1dd   :  { %811 = vmatpush3.bf16.msra.mxu1 %v681_v10 }
 0x1de   :  { %812 = vmatprep.subr.bf16.mxu1 %v900_v12 }
 0x1e1   :  { %813 = vmatpush3.bf16.msra.mxu1 %v680_v13 }
 0x1e2   :  { %814 = vmatprep.subr.bf16.mxu1 %v900_v12 }
 0x1e5   :  { %815 = vmatpush3.bf16.msra.mxu1 %v679_v25 }
 0x1e6   :  { %816 = vmatprep.subr.bf16.mxu1 %v900_v12 }
 0x1e9   :  { %817 = vmatpush3.bf16.msra.mxu1 %v678_v18 }
 0x1ec   :  { %819 = vmatmul.mubr.bf16.vlgmr.msra.gmra.mxu1 %v677_v4 }
 0x2ac   :  { %v726_v11 = vpop.f32.mrf.mxu1 }
 0x2ad   :  { %v727_v28 = vadd.f32 %v726_v11, %v690_v27 }
 0x2ae   :  { %v820_v29 = vpop.f32.mrf.mxu1 }
 0x2af   :  { %732 = vst [vmem:[%s1235_s9] sm:$0xf] %v727_v28 }
 0x2b0   :  { %v729_v21 = vpop.f32.mrf.mxu1 }
 0x2b2   :  { %v821_v30 = vpop.f32.mrf.mxu1 }

// kernel: _forward_core.3
= control target key start
LH: loop header
LB: loop body
LE: loop exit
PB: predicated region body
PF: predicated region fallthrough
CT: control target
= control target key end

     0   :  { %s3431_s0 = inlined_call_operand.vmem [shape: f32[2,8,32], index: 0, kind: input, shape index: {}, may-alias: {0,11}]   ;;  %s3432_s1 = inlined_call_operand.vmem [shape: f32[4,2,8,8], index: 1, kind: input, shape index: {}]   ;;  %s3433_s2 = inlined_call_operand.vmem [shape: f32[2,8,1], index: 2, kind: input, shape index: {}]   ;;  %s3434_s3 = inlined_call_operand.vmem [shape: f32[2,1,1,8], index: 3, kind: input, shape index: {}]   ;;  %s3435_s4 = inlined_call_operand.vmem [shape: bf16[2,3,4,32,8], index: 4, kind: input, shape index: {}]   ;;  %s3436_s5 = inlined_call_operand.vmem [shape: f32[2,3,4,1,8], index: 5, kind: input, shape index: {}]   ;;  %s3437_s6 = inlined_call_operand.vmem [shape: bf16[2,4,8,32], index: 6, kind: input, shape index: {}]   ;;  %s3438_s7 = inlined_call_operand.vmem [shape: bf16[2,32,64], index: 7, kind: input, shape index: {}]   ;;  %s3439_s8 = inlined_call_operand.vmem [shape: bf16[2,64,32], index: 8, kind: input, shape index: {}]   ;;  %s3440_s9 = inlined_call_operand.vmem [shape: f32[2,8,32], index: 9, kind: input, shape index: {}]   ;;  %s3441_s10 = inlined_call_operand.vmem [shape: f32[2,1,64], index: 10, kind: input, shape index: {}]   ;;  %s3442_s11 = inlined_call_operand.vmem [shape: f32[2,8,32], index: 11, kind: output, shape index: {}, may-alias: {0,11}]  }
   0x1   :  { %3448 = sst [smem:[#allocation11_spill]] %s3431_s0 }
   0x2   :  { %3449 = sst [smem:[#allocation12_spill]] %s3432_s1 }
   0x3   :  { %3450 = sst [smem:[#allocation13_spill]] %s3433_s2 }
   0x4   :  { %3451 = sst [smem:[#allocation14_spill]] %s3434_s3 }
   0x5   :  { %3452 = sst [smem:[#allocation15_spill]] %s3435_s4 }
   0x6   :  { %3453 = sst [smem:[#allocation16_spill]] %s3437_s6 }
   0x7   :  { %s3032_s17 = smov 0   ;;  %s3034_s18 = smov 0  }
   0x8   :  { %s3036_s19 = smov 0   ;;  %s3038_s20 = smov 0  }
   0x9   :  { %s3040_s21 = smov 0   ;;  %s3042_s22 = smov 0  }
   0xa   :  { %s3044_s23 = smov 0  }
   0xb LB: > { %3454 = sst [smem:[#allocation4_spill]] %s2947_s18  ;;  %s30_s24 = sadd.s32 1, %s2959_s21  ;;  %s2967_s23 = sphi %s3044_s23, %s21_s23   ;;  %s2963_s22 = sphi %s3042_s22, %s3475_s22   ;;  %s2959_s21 = sphi %s3040_s21, %s3474_s21   ;;  %s2955_s20 = sphi %s3038_s20, %s3473_s20   ;;  %s2951_s19 = sphi %s3036_s19, %s3472_s19   ;;  %s2947_s18 = sphi %s3034_s18, %s3471_s18   ;;  %s2943_s17 = sphi %s3032_s17, %s3470_s17  }
   0xc   : > { %3455 = sst [smem:[#allocation5_spill]] %s2959_s21  ;;  %p31_p0 = scmp.ge.s32.totalorder %s30_s24, 2 }
   0xd   : > { %3456 = sst [smem:[#allocation6_spill]] %s2963_s22  ;;  %s33_s25 = sadd.s32 1, %s2963_s22 }
   0xe   : > { %3457 = sst [smem:[#allocation7_spill]] %s2967_s23  ;;  %p73_p1 = scmp.ne.s32.totalorder %s2947_s18, %s2943_s17 }
   0xf   : > { %p74_p2 = scmp.eq.s32.totalorder %s2967_s23, 0  ;;  %s3477_s24 = smov (%p31_p0, %s30_s24), 0 }
  0x10   : > { %3458 = sst [smem:[#allocation8_spill]] %s3477_s24  ;;  %s3479_s25 = smov (!%p31_p0, %s33_s25), %s2963_s22 }
  0x11   : > { %p75_p3 = por %p74_p2, %p73_p1  ;;  %p35_p4 = scmp.ge.s32.totalorder %s3479_s25, 2 }
  0x12   : > { %s66_s27 = sadd.s32 1, %s2947_s18  ;;  %p2452_p6 = scmp.ge.s32.totalorder %s2967_s23, 4 }
  0x13   : > { %s3481_s25 = smov (%p35_p4, %s3479_s25), 0 }
  0x14   : > { %3459 = sst [smem:[#allocation9_spill]] %s3481_s25  ;;  %s63_s26 = ssub.s32 %s2963_s22, %s3481_s25 }
  0x15   : > { %p64_p5 = scmp.eq.s32.totalorder %s63_s26, 0  ;;  %359 = sbr.rel (%p2452_p6) target bundleno = 38 (0x26), region = 16 }
  0x17   : > { %s3081_s28 = scalar_select %p64_p5, %s2947_s18, %s66_s27  }
  0x19   : > { %3460 = sst [smem:[#allocation10_spill]] %s3081_s28 }
  0x1a   : > { %369 = sbr.rel (!%p75_p3) target bundleno = 38 (0x26), region = 24  ;;  %s371_s29 = sand.u32 (%p75_p3), 1, %s2947_s18  }
  0x1b   : > { %s2454_s30 = sshll.u32 (%p75_p3), %s2963_s22, 3  ;;  %s2453_s12 = sshll.u32 (%p75_p3), %s371_s29, 5 }
  0x1c   : > { %s3461_s1 = sld [smem:[#allocation12_spill]] (%p75_p3)  ;;  %s373_s16 = scalar_lea.vmem (%p75_p3), [#allocation3], %s2453_s12 }
  0x22   : > { %s375_s15 = scalar_lea.vmem %s3461_s1, %s2454_s30 }
  0x23   : > { %v410_v0 = vld [vmem:[%s375_s15] sm:$0xff]  ;;  %v412_v1 = vld [vmem:[%s375_s15 + $0x10] sm:$0xff] }
  0x24   : > { %v414_v2 = vld [vmem:[%s375_s15 + $0x20] sm:$0xff]  ;;  %411 = vst [vmem:[%s373_s16] sm:$0xff] %v410_v0  ;;  %413 = vst [vmem:[%s373_s16 + $0x8] sm:$0xff] %v412_v1  ;;  %v416_v3 = vld [vmem:[%s375_s15 + $0x30] sm:$0xff] }
  0x25   : > { %415 = vst [vmem:[%s373_s16 + $0x10] sm:$0xff] %v414_v2  ;;  %417 = vst [vmem:[%s373_s16 + $0x18] sm:$0xff] %v416_v3 }
  0x26 PF: > { %p2455_p7 = scmp.ge.s32.totalorder %s2967_s23, 1  ;;  %p487_p8 = scmp.lt.s32.totalorder %s2967_s23, 5 }
  0x28   : > { %p488_p9 = pnand %p2455_p7, %p487_p8 }
  0x29   : > { %s494_s26 = sand.u32 (!%p488_p9), 1, %s2943_s17   ;;  %p574_p10 = scmp.lt.s32.totalorder (!%p488_p9), %s2955_s20, 1 }
  0x2a   : > { %491 = sbr.rel (%p488_p9) target bundleno = 2373 (0x945), region = 98  ;;  %s2456_s27 = sshll.u32 (!%p488_p9), %s494_s26, 5 }
  0x2b   : > { %p585_p11 = scmp.lt.s32.totalorder (!%p488_p9), %s2951_s19, 1  ;;  %s3462_s3 = sld [smem:[#allocation14_spill]] (!%p488_p9) }
  0x2c   : > { %s3464_s2 = sld [smem:[#allocation13_spill]] (!%p488_p9)  ;;  %s496_s26 = scalar_lea.vmem (!%p488_p9), [#allocation3], %s2456_s27 }
  0x2d   : > { %s3465_s6 = sld [smem:[#allocation16_spill]] (!%p488_p9)  ;;  %p2468_p12 = scmp.ne.s32.totalorder (!%p488_p9), %s2951_s19, 0 }
  0x2e   : > { %s3466_s4 = sld [smem:[#allocation15_spill]] (!%p488_p9) }
  0x2f   : > { %s3483_s20 = smov (!%p574_p10, %s2955_s20), 1 }
  0x30   : > { %s3096_s29 = scalar_select %p585_p11, %s2951_s19, 1 }
  0x31   : > { %s3098_s30 = sshll.u32 %s3483_s20, 3  ;;  %s584_s17 = scalar_lea.vmem %s3462_s3, %s3483_s20 }
  0x32   : > { %s581_s25 = scalar_lea.vmem %s3464_s2, %s3098_s30  ;;  %s2799_s24 = smul.u32 192, %s3096_s29 }
  0x33   : > { %s2540_s22 = sshll.u32 %s3096_s29, 4  ;;  %s2800_s21 = smul.u32 12, %s3096_s29 }
  0x34   : > { %s3117_s23 = scalar_lea.vmem %s3465_s6, %s2540_s22  ;;  %s3122_s20 = scalar_lea.vmem %s3466_s4, %s2799_s24 }
  0x35   : > { %s3127_s15 = scalar_lea.vmem %s3438_s7, %s2540_s22  ;;  %s3132_s16 = scalar_lea.vmem %s3436_s5, %s2800_s21 }
  0x36   : > { %s2542_s2 = sshll.u32 %s3096_s29, 5  ;;  %s2466_s6 = sshll.u32 %s3096_s29, 3 }
  0x37   : > { %s3138_s28 = scalar_lea.vmem %s3439_s8, %s2542_s2  ;;  %s3144_s13 = scalar_lea.vmem %s3440_s9, %s2466_s6 }
  0x38   : > { %s615_s14 = scalar_lea.vmem %s3441_s10, %s3096_s29  ;;  %s3154_s21 = scalar_lea.vmem %s3442_s11, %s3098_s30 }
  0x39   : > { %624 = sbr.rel (%p2468_p12) target bundleno = 193 (0xc1), region = 106  ;;  %s3467_s4 = sld [smem:[#allocation11_spill]] (!%p2468_p12) }
  0x3e   : > { %v643_v4 = vlaneseq  ;;  %v640_v5 = vld [vmem:[%s584_s17] sm:$0x1]  ;;  %v2969_v6 = vmov 0   ;;  %v637_v13 = vld [vmem:[%s496_s26 + $0x8] sm:$0xff]  ;;  %v638_v14 = vld [vmem:[%s496_s26 + $0x10] sm:$0xff]  ;;  %vm652_vm1 = vcmask 64512  }
  0x3f   : > { %2860 = vset.pattern.permute.xlu0 %v2969_v6  ;;  %v626_v7 = vld [vmem:[%s581_s25] sm:$0xff]  ;;  %vm641_vm0 = vcmp.gt.f32.partialorder %v640_v5, 0.0  ;;  %v639_v15 = vld [vmem:[%s496_s26 + $0x18] sm:$0xff]  ;;  %s3468_s6 = scalar_lea.vmem %s3467_s4, %s3098_s30  ;;  %vm634_vm3 = vcmask 261120  }
  0x40   : > { %v644_v8 = vshrl.u32 %v643_v4, 7  ;;  %v627_v9 = vsub.f32 1.0, %v626_v7  ;;  %v642_v10 = vsel %vm641_vm0, 1, %v2969_v6  ;;  %v636_v12 = vld [vmem:[%s496_s26] sm:$0xff] }
  0x41   : > { %v625_v21 = vld [vmem:[%s3468_s6] sm:$0xff] }
  0x42   : > { %v645_v11 = vsub.s32 0, %v644_v8  ;;  %630 = vperm.xlu0 %2860, %v627_v9  }
  0x44   : > { %v646_v16 = vrot.slane %v642_v10, %v645_v11 }
  0x46   : > { %vm647_vm2 = vcmp.eq.s32.totalorder %v646_v16, 1 }
  0x47   : > { %v648_v17 = vsel %vm647_vm2, -inf, %v636_v12  ;;  %v649_v18 = vsel %vm647_vm2, -inf, %v637_v13  ;;  %v650_v19 = vsel %vm647_vm2, -inf, %v638_v14  ;;  %v651_v20 = vsel %vm647_vm2, -inf, %v639_v15 }
  0x48   : > { %653 = vst.msk [vmem:[#allocation2] sm:$0xff] %vm652_vm1, %v648_v17  ;;  %654 = vst.msk [vmem:[#allocation2 + $0x8] sm:$0xff] %vm652_vm1, %v649_v18 }
  0x49   : > { %655 = vst.msk [vmem:[#allocation2 + $0x10] sm:$0xff] %vm652_vm1, %v650_v19  ;;  %656 = vst.msk [vmem:[#allocation2 + $0x18] sm:$0xff] %vm652_vm1, %v651_v20 }
  0xbd   : > { %v631_v22 = vpop.permute.xlu0 %630 }
  0xbe   : > { %v633_v23 = vmul.f32 %v631_v22, %v625_v21 }
  0xc0   : > { %635 = vst.msk [vmem:[%s3154_s21] sm:$0xff] %vm634_vm3, %v633_v23 }
  0xc1 PF: > { %vm663_vm4 = vcmask 261120   ;;  %v2861_v31 = vld [vmem:[%s3122_s20 + $0x8] sm:$0xff]   ;;  %v2862_v32 = vld [vmem:[%s3122_s20 + $0x18] sm:$0xff]   ;;  %v2970_v33 = vmov 0.0   ;;  %v2863_v34 = vld [vmem:[%s3122_s20] sm:$0xff]   ;;  %vm2971_vm5 = vmmov 0   ;;  %v678_v39 = vlaneseq }
  0xc2   : > { %2611 = vmatprep.subr.bf16.mxu0 %v2970_v33  ;;  %2619 = vmatprep.subr.bf16.mxu1 %v2970_v33  ;;  %v2864_v35 = vld [vmem:[%s3122_s20 + $0x10] sm:$0xff]   ;;  %v3188_v42 = vld [vmem:[%s3144_s13] sm:$0xff]  ;;  %v2865_v50 = vld [vmem:[%s3122_s20 + $0x28] sm:$0xff]   ;;  %vm1456_vm6 = vcmask 64512   ;;  %vm1700_vm7 = vcmask 1043456   ;;  %vm2219_vm8 = vcmask 523264  }
  0xc3   : > { %2612 = vmatpush3.bf16.msra.mxu0 %v2861_v31  ;;  %2620 = vmatpush3.bf16.msra.mxu1 %v2862_v32  ;;  %v3184_v40 = vshrl.u32 %v678_v39, 7  ;;  %v2866_v51 = vld [vmem:[%s3122_s20 + $0x38] sm:$0xff]   ;;  %v2867_v53 = vld [vmem:[%s3122_s20 + $0x20] sm:$0xff]   ;;  %v2868_v54 = vld [vmem:[%s3122_s20 + $0x30] sm:$0xff]  }
  0xc4   : > { %2613 = vmatprep.subr.bf16.mxu0 %v2970_v33  ;;  %2621 = vmatprep.subr.bf16.mxu1 %v2970_v33  ;;  %v2869_v55 = vld [vmem:[%s3122_s20 + $0x48] sm:$0xff]   ;;  %v2870_v56 = vld [vmem:[%s3122_s20 + $0x58] sm:$0xff]   ;;  %v2871_v57 = vld [vmem:[%s3122_s20 + $0x40] sm:$0xff]  }
  0xc5   : > { %2615 = vmatprep.mubr.msk.bf16.mxu0 %vm2971_vm5, %v2970_v33  ;;  %2623 = vmatprep.mubr.msk.bf16.mxu1 %vm2971_vm5, %v2970_v33  ;;  %v680_v41 = vsub.s32 0, %v3184_v40  ;;  %v685_v43 = vsub.s32 1, %v3184_v40  ;;  %v2872_v58 = vld [vmem:[%s3122_s20 + $0x50] sm:$0xff]   ;;  %v2873_v59 = vld [vmem:[%s3122_s20 + $0x68] sm:$0xff]   ;;  %v2874_v60 = vld [vmem:[%s3122_s20 + $0x78] sm:$0xff]  }
  0xc6   : > { %v2875_v61 = vld [vmem:[%s3122_s20 + $0x60] sm:$0xff]   ;;  %v2876_v62 = vld [vmem:[%s3122_s20 + $0x70] sm:$0xff]   ;;  %v2877_v63 = vld [vmem:[%s3122_s20 + $0x88] sm:$0xff]  }
  0xc7   : > { %v3164_v24 = vld [vmem:[%s3154_s21] sm:$0xff]  ;;  %2614 = vmatpush3.bf16.msra.mxu0 %v2863_v34  ;;  %2622 = vmatpush3.bf16.msra.mxu1 %v2864_v35  ;;  %v681_v44 = vrot.slane %v3188_v42, %v680_v41  ;;  %v686_v46 = vrot.slane %v3188_v42, %v685_v43  ;;  %v2878_v0 = vld [vmem:[%s3122_s20 + $0x98] sm:$0xff]   ;;  %v2880_v2 = vld [vmem:[%s3122_s20 + $0x90] sm:$0xff]  }
  0xc8   : > { %v664_v25 = vsel %vm663_vm4, %v3164_v24, 0.0  ;;  %2627 = vmatprep.subr.bf16.mxu0 %v2970_v33  ;;  %2635 = vmatprep.subr.bf16.mxu1 %v2970_v33  ;;  %v2879_v1 = vld [vmem:[%s3122_s20 + $0x80] sm:$0xff]   ;;  %v2881_v3 = vld [vmem:[%s3122_s20 + $0xa8] sm:$0xff]   ;;  %v2882_v4 = vld [vmem:[%s3122_s20 + $0xb8] sm:$0xff]  }
  0xc9   : > { %665 = vadd.xlane.f32.xlu0 %v664_v25  ;;  %v2883_v5 = vld [vmem:[%s3122_s20 + $0xa0] sm:$0xff]   ;;  %v2884_v6 = vld [vmem:[%s3122_s20 + $0xb0] sm:$0xff]  }
  0xca   : > { %v2485_v23 = vld [vmem:[%s3132_s16 + $0x4] ss:$0 sm:$0xff]  ;;  %v2486_v25 = vld [vmem:[%s3132_s16 + $0x5] ss:$0 sm:$0xff]  ;;  %v2469_v35 = vld [vmem:[%s3132_s16] ss:$0 sm:$0xff] }
 0x152   : > { %v666_v26 = vpop.xlane.xlu0 %665 }
 0x153   : > { %v668_v27 = vmul.f32 0.03125, %v666_v26 }
 0x155   : > { %v669_v28 = vsub.f32 %v3164_v24, %v668_v27 }
 0x157   : > { %v670_v29 = vmul.f32 %v669_v28, %v669_v28 }
 0x159   : > { %v671_v30 = vsel %vm663_vm4, %v670_v29, 0.0 }
 0x15a   : > { %672 = vadd.xlane.f32.xlu0 %v671_v30 }
 0x1e3   : > { %v673_v36 = vpop.xlane.xlu0 %672 }
 0x1e4   : > { %v674_v37 = vmul.f32 0.03125, %v673_v36  ;;  %v2470_v36 = vld [vmem:[%s3132_s16 + $0x1] ss:$0 sm:$0xff] }
 0x1e6   : > { %v675_v38 = vadd.f32 1e-05, %v674_v37 }
 0x1e8   : > { %2891 = vrsqrt.f32 %v675_v38 }
 0x1f5   : > { %v2892_v45 = vpop.eup %2891 }
 0x1f6   : > { %v677_v47 = vmul.f32 %v2892_v45, %v669_v28  ;;  %v2487_v45 = vld [vmem:[%s3132_s16 + $0x6] ss:$0 sm:$0xff] }
 0x1f8   : > { %v682_v48 = vmul.f32 %v681_v44, %v677_v47 }
 0x1fa   : > { %v687_v49 = vadd.f32 %v686_v46, %v682_v48  ;;  %v2488_v46 = vld [vmem:[%s3132_s16 + $0x7] ss:$0 sm:$0xff] }
 0x1fc   : > { %v3195_v52 = vpack.c.bf16 %v687_v49, %v687_v49 }
 0x1fe   : > { %2616 = vmatmul.mubr.msk.bf16.vlgmr.msra.gmra.mxu0 %vm663_vm4, %v3195_v52  ;;  %2624 = vmatmul.mubr.msk.bf16.vlgmr.msra.gmra.mxu1 %vm663_vm4, %v3195_v52 }
 0x1ff   : > { %2628 = vmatpush3.bf16.msra.mxu0 %v2865_v50  ;;  %2636 = vmatpush3.bf16.msra.mxu1 %v2866_v51 }
 0x200   : > { %2629 = vmatprep.subr.bf16.mxu0 %v2970_v33  ;;  %2637 = vmatprep.subr.bf16.mxu1 %v2970_v33 }
 0x201   : > { %2631 = vmatprep.mubr.msk.bf16.mxu0 %vm2971_vm5, %v2970_v33  ;;  %2639 = vmatprep.mubr.msk.bf16.mxu1 %vm2971_vm5, %v2970_v33 }
 0x203   : > { %2630 = vmatpush3.bf16.msra.mxu0 %v2867_v53  ;;  %2638 = vmatpush3.bf16.msra.mxu1 %v2868_v54 }
 0x204   : > { %2643 = vmatprep.subr.bf16.mxu0 %v2970_v33  ;;  %2651 = vmatprep.subr.bf16.mxu1 %v2970_v33 }
 0x206   : > { %2632 = vmatmul.mubr.msk.bf16.vlgmr.msra.gmra.mxu0 %vm663_vm4, %v3195_v52  ;;  %2640 = vmatmul.mubr.msk.bf16.vlgmr.msra.gmra.mxu1 %vm663_vm4, %v3195_v52 }
 0x207   : > { %2644 = vmatpush3.bf16.msra.mxu0 %v2869_v55  ;;  %2652 = vmatpush3.bf16.msra.mxu1 %v2870_v56 }
 0x208   : > { %2645 = vmatprep.subr.bf16.mxu0 %v2970_v33  ;;  %2653 = vmatprep.subr.bf16.mxu1 %v2970_v33 }
 0x209   : > { %2647 = vmatprep.mubr.msk.bf16.mxu0 %vm2971_vm5, %v2970_v33  ;;  %2655 = vmatprep.mubr.msk.bf16.mxu1 %vm2971_vm5, %v2970_v33 }
 0x20b   : > { %2646 = vmatpush3.bf16.msra.mxu0 %v2871_v57  ;;  %2654 = vmatpush3.bf16.msra.mxu1 %v2872_v58 }
 0x20c   : > { %2659 = vmatprep.subr.bf16.mxu0 %v2970_v33  ;;  %2667 = vmatprep.subr.bf16.mxu1 %v2970_v33 }
 0x20e   : > { %2648 = vmatmul.mubr.msk.bf16.vlgmr.msra.gmra.mxu0 %vm663_vm4, %v3195_v52  ;;  %2656 = vmatmul.mubr.msk.bf16.vlgmr.msra.gmra.mxu1 %vm663_vm4, %v3195_v52 }
 0x20f   : > { %2660 = vmatpush3.bf16.msra.mxu0 %v2873_v59  ;;  %2668 = vmatpush3.bf16.msra.mxu1 %v2874_v60  ;;  %v2471_v59 = vld [vmem:[%s3132_s16 + $0x2] ss:$0 sm:$0xff]  ;;  %v2472_v60 = vld [vmem:[%s3132_s16 + $0x3] ss:$0 sm:$0xff] }
 0x210   : > { %2661 = vmatprep.subr.bf16.mxu0 %v2970_v33  ;;  %2669 = vmatprep.subr.bf16.mxu1 %v2970_v33 }
 0x211   : > { %2663 = vmatprep.mubr.msk.bf16.mxu0 %vm2971_vm5, %v2970_v33  ;;  %2671 = vmatprep.mubr.msk.bf16.mxu1 %vm2971_vm5, %v2970_v33 }
 0x213   : > { %2662 = vmatpush3.bf16.msra.mxu0 %v2875_v61  ;;  %2670 = vmatpush3.bf16.msra.mxu1 %v2876_v62 }
 0x214   : > { %2675 = vmatprep.subr.bf16.mxu0 %v2970_v33  ;;  %2683 = vmatprep.subr.bf16.mxu1 %v2970_v33 }
 0x216   : > { %2664 = vmatmul.mubr.msk.bf16.vlgmr.msra.gmra.mxu0 %vm663_vm4, %v3195_v52  ;;  %2672 = vmatmul.mubr.msk.bf16.vlgmr.msra.gmra.mxu1 %vm663_vm4, %v3195_v52 }
 0x217   : > { %2676 = vmatpush3.bf16.msra.mxu0 %v2877_v63  ;;  %2684 = vmatpush3.bf16.msra.mxu1 %v2878_v0 }
 0x218   : > { %2677 = vmatprep.subr.bf16.mxu0 %v2970_v33  ;;  %2685 = vmatprep.subr.bf16.mxu1 %v2970_v33 }
 0x219   : > { %2679 = vmatprep.mubr.msk.bf16.mxu0 %vm2971_vm5, %v2970_v33  ;;  %2687 = vmatprep.mubr.msk.bf16.mxu1 %vm2971_vm5, %v2970_v33 }
 0x21b   : > { %2678 = vmatpush3.bf16.msra.mxu0 %v2879_v1  ;;  %2686 = vmatpush3.bf16.msra.mxu1 %v2880_v2 }
 0x21c   : > { %2691 = vmatprep.subr.bf16.mxu0 %v2970_v33  ;;  %2699 = vmatprep.subr.bf16.mxu1 %v2970_v33 }
 0x21e   : > { %2680 = vmatmul.mubr.msk.bf16.vlgmr.msra.gmra.mxu0 %vm663_vm4, %v3195_v52  ;;  %2688 = vmatmul.mubr.msk.bf16.vlgmr.msra.gmra.mxu1 %vm663_vm4, %v3195_v52 }
 0x21f   : > { %2692 = vmatpush3.bf16.msra.mxu0 %v2881_v3  ;;  %2700 = vmatpush3.bf16.msra.mxu1 %v2882_v4  ;;  %v2501_v3 = vld [vmem:[%s3132_s16 + $0x8] ss:$0 sm:$0xff]  ;;  %v2502_v4 = vld [vmem:[%s3132_s16 + $0x9] ss:$0 sm:$0xff] }
 0x220   : > { %2693 = vmatprep.subr.bf16.mxu0 %v2970_v33  ;;  %2701 = vmatprep.subr.bf16.mxu1 %v2970_v33 }
 0x221   : > { %2695 = vmatprep.mubr.msk.bf16.mxu0 %vm2971_vm5, %v2970_v33  ;;  %2703 = vmatprep.mubr.msk.bf16.mxu1 %vm2971_vm5, %v2970_v33 }
 0x223   : > { %2694 = vmatpush3.bf16.msra.mxu0 %v2883_v5  ;;  %2702 = vmatpush3.bf16.msra.mxu1 %v2884_v6 }
 0x224   : > { %2707 = vmatprep.subr.bf16.mxu0 %v2970_v33  ;;  %2713 = vmatprep.subr.bf16.mxu1 %v2970_v33 }
 0x226   : > { %2696 = vmatmul.mubr.msk.bf16.vlgmr.msra.gmra.mxu0 %vm663_vm4, %v3195_v52  ;;  %2704 = vmatmul.mubr.msk.bf16.vlgmr.msra.gmra.mxu1 %vm663_vm4, %v3195_v52 }
 0x227   : > { %2709 = vmatprep.mubr.msk.bf16.mxu0 %vm2971_vm5, %v2970_v33  ;;  %2715 = vmatprep.mubr.msk.bf16.mxu1 %vm2971_vm5, %v2970_v33 }
 0x2be   : > { %v822_v7 = vpop.f32.mrf.mxu0  ;;  %v874_v8 = vpop.f32.mrf.mxu1 }
 0x2bf   : > { %v823_v47 = vadd.f32 %v2469_v35, %v822_v7  ;;  %v875_v48 = vadd.f32 %v2470_v36, %v874_v8 }
 0x2c0   : > { %v2617_v9 = vpop.f32.mrf.mxu0  ;;  %v2625_v10 = vpop.f32.mrf.mxu1 }
 0x2c1   : > { %v1448_v55 = vpack.c.bf16 %v823_v47, %v823_v47  ;;  %v1449_v56 = vpack.c.bf16 %v875_v48, %v875_v48  ;;  %v661_v48 = vld [vmem:[#allocation2 + $0x18] sm:$0xff] }
 0x2c2   : > { %v825_v11 = vpop.f32.mrf.mxu0  ;;  %v877_v12 = vpop.f32.mrf.mxu1 }
 0x2c4   : > { %v2618_v13 = vpop.f32.mrf.mxu0  ;;  %v2626_v14 = vpop.f32.mrf.mxu1 }
 0x2c6   : > { %v926_v15 = vpop.f32.mrf.mxu0  ;;  %v978_v16 = vpop.f32.mrf.mxu1 }
 0x2c7   : > { %v927_v5 = vadd.f32 %v2471_v59, %v926_v15  ;;  %v979_v6 = vadd.f32 %v2472_v60, %v978_v16 }
 0x2c8   : > { %v2633_v17 = vpop.f32.mrf.mxu0  ;;  %v2641_v18 = vpop.f32.mrf.mxu1 }
 0x2c9   : > { %v1450_v13 = vpack.c.bf16 %v927_v5, %v927_v5  ;;  %v1451_v14 = vpack.c.bf16 %v979_v6, %v979_v6 }
 0x2ca   : > { %v929_v19 = vpop.f32.mrf.mxu0  ;;  %v981_v20 = vpop.f32.mrf.mxu1 }
 0x2cc   : > { %v2634_v21 = vpop.f32.mrf.mxu0  ;;  %v2642_v22 = vpop.f32.mrf.mxu1 }
 0x2ce   : > { %v1054_v26 = vpop.f32.mrf.mxu0  ;;  %v1106_v27 = vpop.f32.mrf.mxu1 }
 0x2cf   : > { %v1055_v28 = vadd.f32 %v2485_v23, %v1054_v26  ;;  %v1107_v29 = vadd.f32 %v2486_v25, %v1106_v27 }
 0x2d0   : > { %v2649_v30 = vpop.f32.mrf.mxu0  ;;  %v2657_v31 = vpop.f32.mrf.mxu1 }
 0x2d1   : > { %v1452_v32 = vpack.c.bf16 %v1055_v28, %v1055_v28  ;;  %v1453_v34 = vpack.c.bf16 %v1107_v29, %v1107_v29 }
 0x2d2   : > { %v1057_v37 = vpop.f32.mrf.mxu0  ;;  %v1109_v38 = vpop.f32.mrf.mxu1 }
 0x2d3   : > { %v1461_v39 = vsel %vm1456_vm6, %v1452_v32, 0  ;;  %v1507_v41 = vsel %vm1456_vm6, %v1453_v34, 0  ;;  %v658_v32 = vld [vmem:[#allocation2] sm:$0xff]  ;;  %v659_v34 = vld [vmem:[#allocation2 + $0x8] sm:$0xff] }
 0x2d4   : > { %v2650_v43 = vpop.f32.mrf.mxu0  ;;  %v2658_v44 = vpop.f32.mrf.mxu1  ;;  %2708 = vmatpush3.bf16.xpose.msra.mxu0 %v1461_v39  ;;  %2714 = vmatpush3.bf16.xpose.msra.mxu1 %v1507_v41 }
 0x2d5   : > { %2719 = vmatprep.subr.bf16.mxu0 %v2970_v33  ;;  %2725 = vmatprep.subr.bf16.mxu1 %v2970_v33 }
 0x2d6   : > { %v1158_v49 = vpop.f32.mrf.mxu0  ;;  %v1210_v50 = vpop.f32.mrf.mxu1 }
 0x2d7   : > { %v1159_v51 = vadd.f32 %v2487_v45, %v1158_v49  ;;  %v1211_v52 = vadd.f32 %v2488_v46, %v1210_v50  ;;  %v660_v49 = vld [vmem:[#allocation2 + $0x10] sm:$0xff] }
 0x2d8   : > { %v2665_v53 = vpop.f32.mrf.mxu0  ;;  %v2673_v54 = vpop.f32.mrf.mxu1 }
 0x2d9   : > { %v1454_v57 = vpack.c.bf16 %v1159_v51, %v1159_v51  ;;  %v1455_v58 = vpack.c.bf16 %v1211_v52, %v1211_v52 }
 0x2da   : > { %v1161_v61 = vpop.f32.mrf.mxu0  ;;  %v1213_v62 = vpop.f32.mrf.mxu1 }
 0x2db   : > { %v1553_v63 = vsel %vm1456_vm6, %v1454_v57, 0  ;;  %v1599_v0 = vsel %vm1456_vm6, %v1455_v58, 0  ;;  %2710 = vmatmul.mubr.msk.bf16.vlgmr.msra.gmra.mxu0 %vm1456_vm6, %v1448_v55  ;;  %2716 = vmatmul.mubr.msk.bf16.vlgmr.msra.gmra.mxu1 %vm1456_vm6, %v1449_v56 }
 0x2dc   : > { %v2666_v1 = vpop.f32.mrf.mxu0  ;;  %v2674_v2 = vpop.f32.mrf.mxu1  ;;  %2720 = vmatpush3.bf16.xpose.msra.mxu0 %v1553_v63  ;;  %2726 = vmatpush3.bf16.xpose.msra.mxu1 %v1599_v0 }
 0x2dd   : > { %2721 = vmatprep.mubr.msk.bf16.mxu0 %vm2971_vm5, %v2970_v33  ;;  %2727 = vmatprep.mubr.msk.bf16.mxu1 %vm2971_vm5, %v2970_v33 }
 0x2de   : > { %v1286_v7 = vpop.f32.mrf.mxu0  ;;  %v1338_v8 = vpop.f32.mrf.mxu1  ;;  %2731 = vmatprep.subr.bf16.mxu0 %v2970_v33  ;;  %2737 = vmatprep.subr.bf16.mxu1 %v2970_v33 }
 0x2df   : > { %v1287_v9 = vadd.f32 %v2501_v3, %v1286_v7  ;;  %v1339_v10 = vadd.f32 %v2502_v4, %v1338_v8 }
 0x2e0   : > { %v2681_v11 = vpop.f32.mrf.mxu0  ;;  %v2689_v12 = vpop.f32.mrf.mxu1 }
 0x2e1   : > { %v1693_v15 = vpack.c.bf16 %v1287_v9, %v1287_v9  ;;  %v1694_v16 = vpack.c.bf16 %v1339_v10, %v1339_v10 }
 0x2e2   : > { %v1289_v17 = vpop.f32.mrf.mxu0  ;;  %v1341_v18 = vpop.f32.mrf.mxu1 }
 0x2e3   : > { %v1702_v19 = vsel %vm1700_vm7, %v1693_v15, 0  ;;  %v1748_v20 = vsel %vm1700_vm7, %v1694_v16, 0  ;;  %2722 = vmatmul.mubr.msk.bf16.vlgmr.msra.gmra.mxu0 %vm1456_vm6, %v1450_v13  ;;  %2728 = vmatmul.mubr.msk.bf16.vlgmr.msra.gmra.mxu1 %vm1456_vm6, %v1451_v14 }
 0x2e4   : > { %v2682_v21 = vpop.f32.mrf.mxu0  ;;  %v2690_v22 = vpop.f32.mrf.mxu1  ;;  %2732 = vmatpush3.bf16.msra.mxu0 %v1702_v19  ;;  %2738 = vmatpush3.bf16.msra.mxu1 %v1748_v20 }
 0x2e5   : > { %2733 = vmatprep.mubr.msk.bf16.mxu0 %vm2971_vm5, %v2970_v33  ;;  %2743 = vmatprep.subr.bf16.mxu0 %v2970_v33  ;;  %v2503_v21 = vld [vmem:[%s3132_s16 + $0xa] ss:$0 sm:$0xff] }
 0x2e6   : > { %v3314_v23 = vpop.f32.mrf.mxu0  ;;  %v3316_v25 = vpop.f32.mrf.mxu1  ;;  %2739 = vmatprep.mubr.msk.bf16.mxu1 %vm2971_vm5, %v2970_v33  ;;  %2749 = vmatprep.subr.bf16.mxu1 %v2970_v33 }
 0x2e8   : > { %v2697_v26 = vpop.f32.mrf.mxu0  ;;  %v2705_v27 = vpop.f32.mrf.mxu1 }
 0x2e9   : > { %v1391_v27 = vadd.f32 %v2503_v21, %v3314_v23 }
 0x2ea   : > { %v1393_v28 = vpop.f32.mrf.mxu0  ;;  %v1445_v29 = vpop.f32.mrf.mxu1 }
 0x2eb   : > { %v2504_v28 = vld [vmem:[%s3132_s16 + $0xb] ss:$0 sm:$0xff] }
 0x2ec   : > { %v2698_v30 = vpop.f32.mrf.mxu0  ;;  %v2706_v31 = vpop.f32.mrf.mxu1 }
 0x2ed   : > { %v1695_v30 = vpack.c.bf16 %v1391_v27, %v1391_v27  ;;  %v1443_v31 = vadd.f32 %v2504_v28, %v3316_v25  ;;  %v2084_v27 = vsub.s32 4, %v3184_v40 }
 0x39b   : > { %v1497_v35 = vpop.f32.mrf.mxu0  ;;  %v1543_v36 = vpop.f32.mrf.mxu1 }
 0x39c   : > { %v1498_v37 = vadd.f32 %v1497_v35, %v658_v32  ;;  %v1544_v38 = vadd.f32 %v1543_v36, %v659_v34  ;;  %v1794_v36 = vsel %vm1700_vm7, %v1695_v30, 0 }
 0x39d   : > { %v2711_v39 = vpop.f32.mrf.mxu0  ;;  %v2717_v41 = vpop.f32.mrf.mxu1 }
 0x39e   : > { %1641 = vst.msk [vmem:[#allocation2] sm:$0xff] %vm1456_vm6, %v1498_v37  ;;  %1642 = vst.msk [vmem:[#allocation2 + $0x8] sm:$0xff] %vm1456_vm6, %v1544_v38  ;;  %v1645_v43 = vsel %vm1456_vm6, %v1498_v37, -inf  ;;  %v1648_v50 = vsel %vm1456_vm6, %v1544_v38, -inf }
 0x39f   : > { %v1546_v44 = vpop.f32.mrf.mxu1  ;;  %1646 = vmax.xlane.f32.xlu1 %v1645_v43  ;;  %v1500_v45 = vpop.f32.mrf.mxu0  ;;  %v1886_v43 = vld [vmem:[%s3117_s23] sm:$0xf] }
 0x3a1   : > { %v2712_v46 = vpop.f32.mrf.mxu0  ;;  %v2718_v47 = vpop.f32.mrf.mxu1 }
 0x3a2   : > { %v1894_v47 = vsel %vm1700_vm7, %v1886_v43, 0 }
 0x3a3   : > { %v1635_v51 = vpop.f32.mrf.mxu1  ;;  %1649 = vmax.xlane.f32.xlu1 %v1648_v50  ;;  %v1589_v52 = vpop.f32.mrf.mxu0 }
 0x3a4   : > { %v1636_v53 = vadd.f32 %v1635_v51, %v661_v48  ;;  %v1590_v54 = vadd.f32 %v1589_v52, %v660_v49  ;;  %v1887_v49 = vld [vmem:[%s3117_s23 + $0x4] sm:$0xf]  ;;  %v1888_v51 = vld [vmem:[%s3117_s23 + $0x8] sm:$0xf] }
 0x3a5   : > { %v2723_v55 = vpop.f32.mrf.mxu0  ;;  %v2729_v56 = vpop.f32.mrf.mxu1  ;;  %v1940_v50 = vsel %vm1700_vm7, %v1887_v49, 0  ;;  %v2886_v49 = vld [vmem:[%s3127_s15] sm:$0xff]  }
 0x3a6   : > { %1644 = vst.msk [vmem:[#allocation2 + $0x18] sm:$0xff] %vm1456_vm6, %v1636_v53  ;;  %1643 = vst.msk [vmem:[#allocation2 + $0x10] sm:$0xff] %vm1456_vm6, %v1590_v54  ;;  %v1654_v57 = vsel %vm1456_vm6, %v1636_v53, -inf  ;;  %v1651_v58 = vsel %vm1456_vm6, %v1590_v54, -inf  ;;  %v1889_v56 = vld [vmem:[%s3117_s23 + $0xc] sm:$0xf] }
 0x3a7   : > { %v1638_v59 = vpop.f32.mrf.mxu1  ;;  %1655 = vmax.xlane.f32.xlu1 %v1654_v57  ;;  %1652 = vmax.xlane.f32.xlu0 %v1651_v58  ;;  %v1592_v60 = vpop.f32.mrf.mxu0 }
 0x3a8   : > { %v2032_v60 = vsel %vm1700_vm7, %v1889_v56, 0 }
 0x3a9   : > { %v2724_v61 = vpop.f32.mrf.mxu0  ;;  %v2730_v62 = vpop.f32.mrf.mxu1 }
 0x428   : > { %v1647_v63 = vpop.xlane.xlu1 %1646 }
 0x429   : > { %v1657_v0 = vsub.f32 %v1498_v37, %v1647_v63  ;;  %v1696_v37 = vpack.c.bf16 %v1443_v31, %v1443_v31 }
 0x42b   : > { %v1661_v1 = vmul.f32 1.442695, %v1657_v0  ;;  %v1840_v25 = vsel %vm1700_vm7, %v1696_v37, 0 }
 0x42c   : > { %v1650_v2 = vpop.xlane.xlu1 %1649 }
 0x42d   : > { %2893 = vpow2.f32 %v1661_v1  ;;  %v1658_v3 = vsub.f32 %v1544_v38, %v1650_v2 }
 0x42f   : > { %v1663_v4 = vmul.f32 1.442695, %v1658_v3 }
 0x430   : > { %v1656_v5 = vpop.xlane.xlu1 %1655  ;;  %v1653_v6 = vpop.xlane.xlu0 %1652 }
 0x431   : > { %2895 = vpow2.f32 %v1663_v4  ;;  %v1660_v7 = vsub.f32 %v1636_v53, %v1656_v5  ;;  %v1659_v8 = vsub.f32 %v1590_v54, %v1653_v6  ;;  %v1986_v54 = vsel %vm1700_vm7, %v1888_v51, 0 }
 0x433   : > { %v1667_v9 = vmul.f32 1.442695, %v1660_v7  ;;  %v1665_v10 = vmul.f32 1.442695, %v1659_v8 }
 0x435   : > { %2897 = vpow2.f32 %v1667_v9 }
 0x436   : > { %2899 = vpow2.f32 %v1665_v10 }
 0x43a   : > { %v2894_v11 = vpop.eup %2893 }
 0x43b   : > { %v1669_v12 = vsel %vm1456_vm6, %v2894_v11, 0.0 }
 0x43c   : > { %1670 = vadd.xlane.f32.xlu0 %v1669_v12 }
 0x43e   : > { %v2896_v13 = vpop.eup %2895 }
 0x43f   : > { %v1672_v14 = vsel %vm1456_vm6, %v2896_v13, 0.0 }
 0x440   : > { %1673 = vadd.xlane.f32.xlu1 %v1672_v14 }
 0x442   : > { %v2898_v15 = vpop.eup %2897 }
 0x443   : > { %v2900_v16 = vpop.eup %2899  ;;  %v1678_v17 = vsel %vm1456_vm6, %v2898_v15, 0.0 }
 0x444   : > { %1679 = vadd.xlane.f32.xlu1 %v1678_v17  ;;  %v1675_v18 = vsel %vm1456_vm6, %v2900_v16, 0.0 }
 0x445   : > { %1676 = vadd.xlane.f32.xlu0 %v1675_v18 }
 0x4c5   : > { %v1671_v19 = vpop.xlane.xlu0 %1670 }
 0x4c6   : > { %2901 = vrcp.f32 %v1671_v19 }
 0x4c9   : > { %v1674_v20 = vpop.xlane.xlu1 %1673 }
 0x4ca   : > { %2903 = vrcp.f32 %v1674_v20 }
 0x4cd   : > { %v1680_v22 = vpop.xlane.xlu1 %1679 }
 0x4ce   : > { %2905 = vrcp.f32 %v1680_v22  ;;  %v1677_v26 = vpop.xlane.xlu0 %1676 }
 0x4cf   : > { %2907 = vrcp.f32 %v1677_v26 }
 0x4d3   : > { %v2902_v29 = vpop.eup %2901 }
 0x4d4   : > { %v1685_v32 = vmul.f32 %v2902_v29, %v2894_v11 }
 0x4d6   : > { %v1689_v34 = vpack.c.bf16 %v1685_v32, %v1685_v32 }
 0x4d7   : > { %v2904_v35 = vpop.eup %2903 }
 0x4d8   : > { %2734 = vmatmul.mubr.msk.bf16.vlgmr.msra.gmra.mxu0 %vm1456_vm6, %v1689_v34  ;;  %v1686_v38 = vmul.f32 %v2904_v35, %v2896_v13 }
 0x4d9   : > { %2744 = vmatpush3.bf16.msra.mxu0 %v1794_v36  ;;  %2745 = vmatprep.mubr.msk.bf16.mxu0 %vm2971_vm5, %v2970_v33  ;;  %v2085_v36 = vrot.slane %v3188_v42, %v2084_v27 }
 0x4da   : > { %v1690_v23 = vpack.c.bf16 %v1686_v38, %v1686_v38  ;;  %2755 = vmatprep.subr.bf16.mxu0 %v2970_v33 }
 0x4db   : > { %v2906_v39 = vpop.eup %2905 }
 0x4dc   : > { %v2908_v41 = vpop.eup %2907  ;;  %2740 = vmatmul.mubr.msk.bf16.vlgmr.msra.gmra.mxu1 %vm1456_vm6, %v1690_v23  ;;  %v1688_v45 = vmul.f32 %v2906_v39, %v2898_v15 }
 0x4dd   : > { %2750 = vmatpush3.bf16.msra.mxu1 %v1840_v25  ;;  %v1687_v44 = vmul.f32 %v2908_v41, %v2900_v16  ;;  %2751 = vmatprep.mubr.msk.bf16.mxu1 %vm2971_vm5, %v2970_v33 }
 0x4de   : > { %2761 = vmatprep.subr.bf16.mxu1 %v2970_v33  ;;  %v1692_v48 = vpack.c.bf16 %v1688_v45, %v1688_v45 }
 0x4df   : > { %v1691_v46 = vpack.c.bf16 %v1687_v44, %v1687_v44 }
 0x4e1   : > { %2746 = vmatmul.mubr.msk.bf16.vlgmr.msra.gmra.mxu0 %vm1456_vm6, %v1691_v46 }
 0x4e2   : > { %2756 = vmatpush3.bf16.msra.mxu0 %v1894_v47  ;;  %2757 = vmatprep.mubr.msk.bf16.mxu0 %vm2971_vm5, %v2970_v33 }
 0x4e3   : > { %2767 = vmatprep.subr.bf16.mxu0 %v2970_v33 }
 0x4e4   : > { %2752 = vmatmul.mubr.msk.bf16.vlgmr.msra.gmra.mxu1 %vm1456_vm6, %v1692_v48  ;;  %v2885_v48 = vld [vmem:[%s3127_s15 + $0x8] sm:$0xff]  }
 0x4e5   : > { %2763 = vmatprep.mubr.msk.bf16.mxu1 %vm2971_vm5, %v2970_v33  ;;  %2762 = vmatpush3.bf16.msra.mxu1 %v1940_v50 }
 0x4e6   : > { %2773 = vmatprep.subr.bf16.mxu1 %v2970_v33 }
 0x598   : > { %v1738_v52 = vpop.f32.mrf.mxu0 }
 0x599   : > { %v1882_v53 = vpack.c.bf16 %v1738_v52, %v1738_v52  ;;  %v2102_v52 = vsub.s32 2, %v3184_v40 }
 0x59a   : > { %v2735_v55 = vpop.f32.mrf.mxu0 }
 0x59b   : > { %2758 = vmatmul.mubr.msk.bf16.vlgmr.msra.gmra.mxu0 %vm1456_vm6, %v1882_v53  ;;  %v2107_v53 = vsub.s32 3, %v3184_v40 }
 0x59c   : > { %v1741_v57 = vpop.f32.mrf.mxu0  ;;  %v1784_v58 = vpop.f32.mrf.mxu1  ;;  %2768 = vmatpush3.bf16.msra.mxu0 %v1986_v54  ;;  %2769 = vmatprep.mubr.msk.bf16.mxu0 %vm2971_vm5, %v2970_v33  ;;  %v2103_v54 = vrot.slane %v3188_v42, %v2102_v52 }
 0x59d   : > { %v1883_v59 = vpack.c.bf16 %v1784_v58, %v1784_v58  ;;  %2779 = vmatprep.subr.bf16.mxu0 %v2970_v33  ;;  %v2108_v57 = vrot.slane %v3188_v42, %v2107_v53 }
 0x59e   : > { %v2736_v61 = vpop.f32.mrf.mxu0  ;;  %v2741_v62 = vpop.f32.mrf.mxu1 }
 0x59f   : > { %2764 = vmatmul.mubr.msk.bf16.vlgmr.msra.gmra.mxu1 %vm1456_vm6, %v1883_v59  ;;  %v2887_v61 = vld [vmem:[%s3138_s28 + $0x18] sm:$0xff]   ;;  %v2888_v62 = vld [vmem:[%s3138_s28 + $0x10] sm:$0xff]  }
 0x5a0   : > { %v1787_v63 = vpop.f32.mrf.mxu1  ;;  %2774 = vmatpush3.bf16.msra.mxu1 %v2032_v60  ;;  %2775 = vmatprep.mubr.msk.bf16.mxu1 %vm2971_vm5, %v2970_v33 }
 0x5a1   : > { %v1830_v0 = vpop.f32.mrf.mxu0  ;;  %2787 = vmatprep.subr.bf16.mxu1 %v2970_v33  ;;  %v2889_v63 = vld [vmem:[%s3138_s28 + $0x8] sm:$0xff]  }
 0x5a2   : > { %v1884_v1 = vpack.c.bf16 %v1830_v0, %v1830_v0  ;;  %v2742_v2 = vpop.f32.mrf.mxu1  ;;  %v2890_v0 = vld [vmem:[%s3138_s28] sm:$0xff]  }
 0x5a3   : > { %v2747_v3 = vpop.f32.mrf.mxu0 }
 0x5a4   : > { %2770 = vmatmul.mubr.msk.bf16.vlgmr.msra.gmra.mxu0 %vm1456_vm6, %v1884_v1  ;;  %v1876_v4 = vpop.f32.mrf.mxu1  ;;  %v2529_v1 = vld [vmem:[%s615_s14] ss:$0 sm:$0xff] }
 0x5a5   : > { %v1833_v5 = vpop.f32.mrf.mxu0  ;;  %v1885_v6 = vpack.c.bf16 %v1876_v4, %v1876_v4  ;;  %2783 = vmatprep.mubr.msk.bf16.mxu0 %vm2971_vm5, %v2970_v33  ;;  %2780 = vmatpush3.bf16.msra.mxu0 %v2885_v48 }
 0x5a6   : > { %v2753_v7 = vpop.f32.mrf.mxu1  ;;  %2781 = vmatprep.subr.bf16.mxu0 %v2970_v33 }
 0x5a7   : > { %v2748_v8 = vpop.f32.mrf.mxu0  ;;  %2776 = vmatmul.mubr.msk.bf16.vlgmr.msra.gmra.mxu1 %vm1456_vm6, %v1885_v6 }
 0x5a8   : > { %v1879_v9 = vpop.f32.mrf.mxu1  ;;  %2795 = vmatprep.mubr.msk.bf16.mxu1 %vm2971_vm5, %v2970_v33  ;;  %2788 = vmatpush3.bf16.msra.mxu1 %v2887_v61 }
 0x5a9   : > { %2782 = vmatpush3.bf16.msra.mxu0 %v2886_v49  ;;  %2789 = vmatprep.subr.bf16.mxu1 %v2970_v33 }
 0x5aa   : > { %v2754_v10 = vpop.f32.mrf.mxu1 }
 0x5ac   : > { %2790 = vmatpush3.bf16.msra.mxu1 %v2888_v62 }
 0x5ad   : > { %2791 = vmatprep.subr.bf16.mxu1 %v2970_v33 }
 0x5b0   : > { %2792 = vmatpush3.bf16.msra.mxu1 %v2889_v63 }
 0x5b1   : > { %2793 = vmatprep.subr.bf16.mxu1 %v2970_v33 }
 0x5b4   : > { %2794 = vmatpush3.bf16.msra.mxu1 %v2890_v0 }
 0x65b   : > { %v1930_v11 = vpop.f32.mrf.mxu0 }
 0x65c   : > { %v2074_v19 = vsel %vm663_vm4, %v1930_v11, 0.0 }
 0x65d   : > { %v2759_v12 = vpop.f32.mrf.mxu0 }
 0x65e   : > { %v2193_v12 = vsub.s32 5, %v3184_v40 }
 0x65f   : > { %v1933_v13 = vpop.f32.mrf.mxu0  ;;  %v1976_v14 = vpop.f32.mrf.mxu1 }
 0x660   : > { %v2075_v17 = vsel %vm663_vm4, %v1976_v14, 0.0  ;;  %v2194_v13 = vrot.slane %v3188_v42, %v2193_v12 }
 0x661   : > { %v2760_v15 = vpop.f32.mrf.mxu0  ;;  %v2765_v16 = vpop.f32.mrf.mxu1  ;;  %v2076_v21 = vadd.f32 %v2075_v17, %v2074_v19 }
 0x663   : > { %v1979_v18 = vpop.f32.mrf.mxu1 }
 0x664   : > { %v2022_v20 = vpop.f32.mrf.mxu0 }
 0x665   : > { %v2077_v22 = vsel %vm663_vm4, %v2022_v20, 0.0  ;;  %v2766_v26 = vpop.f32.mrf.mxu1 }
 0x666   : > { %v2771_v28 = vpop.f32.mrf.mxu0  ;;  %v2078_v29 = vadd.f32 %v2077_v22, %v2076_v21 }
 0x667   : > { %v2068_v30 = vpop.f32.mrf.mxu1 }
 0x668   : > { %v2025_v31 = vpop.f32.mrf.mxu0  ;;  %v2079_v32 = vsel %vm663_vm4, %v2068_v30, 0.0 }
 0x669   : > { %v2080_v34 = vadd.f32 %v2079_v32, %v2078_v29  ;;  %v2777_v35 = vpop.f32.mrf.mxu1 }
 0x66a   : > { %v2772_v37 = vpop.f32.mrf.mxu0 }
 0x66b   : > { %v2081_v38 = vadd.f32 %v2080_v34, %v3164_v24  ;;  %v2071_v23 = vpop.f32.mrf.mxu1 }
 0x66d   : > { %v2778_v39 = vpop.f32.mrf.mxu1  ;;  %v2086_v41 = vadd.f32 %v2085_v36, %v2081_v38 }
 0x66f   : > { %v2087_v25 = vsel %vm663_vm4, %v2086_v41, 0.0 }
 0x670   : > { %2088 = vadd.xlane.f32.xlu0 %v2087_v25 }
 0x6f9   : > { %v2089_v43 = vpop.xlane.xlu0 %2088 }
 0x6fa   : > { %v2090_v44 = vmul.f32 0.03125, %v2089_v43 }
 0x6fc   : > { %v2091_v45 = vsub.f32 %v2086_v41, %v2090_v44 }
 0x6fe   : > { %v2092_v46 = vmul.f32 %v2091_v45, %v2091_v45 }
 0x700   : > { %v2093_v47 = vsel %vm663_vm4, %v2092_v46, 0.0 }
 0x701   : > { %2094 = vadd.xlane.f32.xlu1 %v2093_v47 }
 0x78a   : > { %v2095_v24 = vpop.xlane.xlu1 %2094 }
 0x78b   : > { %v2096_v50 = vmul.f32 0.03125, %v2095_v24 }
 0x78d   : > { %v2097_v51 = vadd.f32 1e-05, %v2096_v50 }
 0x78f   : > { %2909 = vrsqrt.f32 %v2097_v51 }
 0x79c   : > { %v2910_v55 = vpop.eup %2909 }
 0x79d   : > { %v2099_v56 = vmul.f32 %v2910_v55, %v2091_v45 }
 0x79f   : > { %v2104_v58 = vmul.f32 %v2103_v54, %v2099_v56 }
 0x7a1   : > { %v2109_v59 = vadd.f32 %v2108_v57, %v2104_v58 }
 0x7a3   : > { %v2110_v60 = vpack.c.bf16 %v2109_v59, %v2109_v59 }
 0x7a5   : > { %2784 = vmatmul.mubr.msk.bf16.vlgmr.msra.gmra.mxu0 %vm663_vm4, %v2110_v60 }
 0x865   : > { %v2171_v2 = vpop.f32.mrf.mxu0 }
 0x866   : > { %v2172_v3 = vadd.f32 %v2529_v1, %v2171_v2 }
 0x867   : > { %v2785_v4 = vpop.f32.mrf.mxu0 }
 0x868   : > { %v2178_v5 = vmul.f32 0.70710677, %v2172_v3  ;;  %v2177_v9 = vmul.f32 0.5, %v2172_v3 }
 0x869   : > { %v2174_v6 = vpop.f32.mrf.mxu0 }
 0x86a   : > { %2911 = verf.f32 %v2178_v5 }
 0x86b   : > { %v2786_v7 = vpop.f32.mrf.mxu0 }
 0x877   : > { %v2912_v8 = vpop.eup %2911 }
 0x878   : > { %v2180_v10 = vadd.f32 1.0, %v2912_v8 }
 0x87a   : > { %v2181_v11 = vmul.f32 %v2180_v10, %v2177_v9 }
 0x87c   : > { %v2182_v33 = vpack.c.bf16 %v2181_v11, %v2181_v11 }
 0x87e   : > { %2796 = vmatmul.mubr.msk.bf16.vlgmr.msra.gmra.mxu1 %vm2219_vm8, %v2182_v33 }
 0x93e   : > { %v2257_v14 = vpop.f32.mrf.mxu1 }
 0x93f   : > { %v2258_v15 = vadd.f32 %v2257_v14, %v2194_v13 }
 0x940   : > { %v2797_v16 = vpop.f32.mrf.mxu1 }
 0x941   : > { %v2263_v17 = vadd.f32 %v2258_v15, %v2086_v41 }
 0x942   : > { %v2260_v18 = vpop.f32.mrf.mxu1 }
 0x943   : > { %2264 = vst.msk [vmem:[%s3154_s21] sm:$0xff] %vm663_vm4, %v2263_v17 }
 0x944   : > { %v2798_v19 = vpop.f32.mrf.mxu1 }
 0x945 PF: > { %s3469_s25 = sld [smem:[#allocation7_spill]] }
 0x946   : > { %s3470_s17 = sld [smem:[#allocation4_spill]] }
 0x947   : > { %s3471_s18 = sld [smem:[#allocation10_spill]] }
 0x948   : > { %s3472_s19 = sld [smem:[#allocation5_spill]] }
 0x949   : > { %s3473_s20 = sld [smem:[#allocation6_spill]] }
 0x94a   : > { %s3474_s21 = sld [smem:[#allocation8_spill]] }
 0x94b   : > { %s21_s23 = sadd.s32 1, %s3469_s25   ;;  %s3475_s22 = sld [smem:[#allocation9_spill]] }
 0x94c   : > { %p18_p13 = scmp.ge.s32.totalorder %s21_s23, 6  }
 0x94e   :  { %20 = sbr.rel (!%p18_p13) target bundleno = 11 (0xb), region = 171 }

</bundles_post_ra>
